<compile_context>
chip_gen: v7x
topology: tpu7x:2x2x1
jax: 0.10.0
libtpu: 0.0.40
codegen_flags: <defaults>
</compile_context>

<pallas_src>
import functools

import numpy as np
import jax
import jax.numpy as jnp
from jax import lax
from jax.experimental import pallas as pl
from jax.experimental.pallas import tpu as pltpu

_EPS = 1e-5

# Architecture constants (input image is 1 x 112 x 112):
#   conv1: 6x6 stride 3 -> 36x36, pool 2x2 -> 18x18, C=8
#   conv2: 4x4 stride 2 ->  8x8,  pool 2x2 ->  4x4,  C=16  -> flatten = 256
_C1, _C2 = 8, 16
_K1 = 36                       # conv1 taps (6*6, Cin=1)
_T2 = 16                       # conv2 taps (4*4)
_NPIX = 16                     # final pooled pixels (4x4)
_ROWS = 4 * 4 * _NPIX          # 256 patch rows / sample: (conv1-pool, conv2-pool, pixel)
_KP = _T2 * _K1                # 576 packed lanes: (conv2 tap, conv1 tap)
_NC = _T2 * _C1                # 128 conv1 output lanes: (conv2 tap, channel)


# ------------------------------ Pallas kernel -------------------------------

def _critic_kernel(p_ref, vga_ref, w1_ref, s1_ref, t1_ref, w2_ref, s2_ref,
                   t2_ref, wb_ref, bb_ref, w1i_ref, w1v_ref, b1_ref,
                   w2h_ref, b2h_ref, w3_ref, b3_ref, o_ref):
    f32, bf16 = jnp.float32, jnp.bfloat16
    dot = functools.partial(jnp.dot, preferred_element_type=f32)
    relu = lambda x: jnp.maximum(x, 0.0)

    # conv1 over ALL 16 conv2 taps in one lane-dense MXU dot:
    #   (256, 576) bf16 @ block-diag (576, 128) bf16 -> (256, 128) f32,
    #   lanes = (conv2 tap, conv1 channel).
    y = dot(p_ref[0], w1_ref[...])
    y = y * s1_ref[...] + t1_ref[...]                    # eval BN1 (pre-pool)
    # conv1 2x2 max-pool: the 4 pool slots are the 4 aligned 64-row chunks.
    y = jnp.maximum(jnp.maximum(y[0:64], y[64:128]),
                    jnp.maximum(y[128:192], y[192:256]))
    y1 = relu(y).astype(bf16)                            # (64,128) rows=(d2,pixel)

    # conv2: lanes (tap, c1) already form the im2col row -> ONE dot.
    z = dot(y1, w2_ref[...])                             # (64, 16) f32
    z = z * s2_ref[...] + t2_ref[...]                    # eval BN2 (pre-pool)
    z = jnp.maximum(jnp.maximum(z[0:16], z[16:32]),
                    jnp.maximum(z[32:48], z[48:64]))     # conv2 2x2 max-pool
    y2 = relu(z).astype(bf16)                            # (16,16) rows=pixel, lanes=c2

    # Head, conv part: 16 per-pixel (1,16)@(16,128) dots, tree-reduced
    # (no serial accumulation chain).
    hs = [dot(y2[s:s + 1, :], w1i_ref[s]) for s in range(_NPIX)]
    while len(hs) > 1:
        hs = [hs[2 * i] + hs[2 * i + 1] for i in range(len(hs) // 2)]
    h1 = hs[0]                                           # (1, 128) f32

    # fc_vel / fc_goal / fc_action fused as one block-diagonal matmul.
    bh = relu(dot(vga_ref[0], wb_ref[...]) + bb_ref[...])            # (1, 96)
    h1 = relu(h1 + dot(bh.astype(bf16), w1v_ref[...]) + b1_ref[...])
    # Dropout(0.1): identity in eval/inference mode.
    h2 = relu(dot(h1.astype(bf16), w2h_ref[...]) + b2h_ref[...])
    o_ref[0] = dot(h2.astype(bf16), w3_ref[...]) + b3_ref[...]


# ---------------------------- pallas_call wrapper ----------------------------

def _full_spec(x):
    """Whole-array VMEM block, constant across the batch grid."""
    if x.ndim == 2:
        return pl.BlockSpec(x.shape, lambda i: (0, 0))
    return pl.BlockSpec(x.shape, lambda i: (0, 0, 0))


def _critic_call(patches, vga, hp, b):
    weights = (hp["w1"], hp["s1"], hp["t1"], hp["w2"], hp["s2"], hp["t2"],
               hp["wb"], hp["bb"], hp["w1i"], hp["w1v"], hp["b1"],
               hp["w2h"], hp["b2h"], hp["w3"], hp["b3"])

    in_specs = ([pl.BlockSpec((1, _ROWS, _KP), lambda i: (i, 0, 0)),
                 pl.BlockSpec((1, 1, 6), lambda i: (i, 0, 0))]
                + [_full_spec(w) for w in weights])
    out_specs = pl.BlockSpec((1, 1, 2), lambda i: (i, 0, 0))

    flops_per_sample = 2 * (_ROWS * _KP * _NC + 64 * _NC * _C2
                            + _NPIX * _C2 * 128 + 6 * 96 + 96 * 128
                            + 128 * 64 + 64 * 2)
    weight_bytes = sum(int(w.size) * w.dtype.itemsize for w in weights)
    block_bytes = (_ROWS * _KP + 6) * 2 + 2 * 4
    bytes_accessed = b * block_bytes + weight_bytes
    # Real footprint is ~a few MiB; never request all of v7x's 64 MiB VMEM.
    vmem_limit = min(max(weight_bytes + 4 * block_bytes + (4 << 20), 16 << 20),
                     48 << 20)

    out = pl.pallas_call(
        _critic_kernel,
        out_shape=jax.ShapeDtypeStruct((b, 1, 2), jnp.float32),
        grid=(b,),
        in_specs=in_specs,
        out_specs=out_specs,
        cost_estimate=pl.CostEstimate(flops=b * flops_per_sample,
                                      transcendentals=0,
                                      bytes_accessed=int(bytes_accessed)),
        compiler_params=pltpu.CompilerParams(
            dimension_semantics=("parallel",),
            vmem_limit_bytes=int(vmem_limit)),
    )(patches, vga, *weights)
    return out.reshape(b, 2)


# ------------------------------- JAX/XLA glue --------------------------------

def _dup_index():
    """Static image coordinates 24*p + 12*d2 + 6*k2 + 3*d1 + k1 for the
    lane-packed, pool-slotted im2col of BOTH conv layers (axis order
    pixel, conv2-pool, conv2-tap, conv1-pool, conv1-tap)."""
    pp = np.arange(4).reshape(4, 1, 1, 1, 1)   # pooled output coordinate
    d2 = np.arange(2).reshape(1, 2, 1, 1, 1)   # conv2-pool offset
    k2 = np.arange(4).reshape(1, 1, 4, 1, 1)   # conv2 tap
    d1 = np.arange(2).reshape(1, 1, 1, 2, 1)   # conv1-pool offset
    k1 = np.arange(6).reshape(1, 1, 1, 1, 6)   # conv1 tap
    return (24 * pp + 12 * d2 + 6 * k2 + 3 * d1 + k1).reshape(-1)   # (384,)


def _prep_params(p):
    f32, bf16 = jnp.float32, jnp.bfloat16
    s1 = p["bn1_g"] / jnp.sqrt(p["bn1_v"] + _EPS)
    t1 = (p["c1_b"] - p["bn1_m"]) * s1 + p["bn1_b"]
    s2 = p["bn2_g"] / jnp.sqrt(p["bn2_v"] + _EPS)
    t2 = (p["c2_b"] - p["bn2_m"]) * s2 + p["bn2_b"]

    # conv1 weight (36, 8), then block-diagonal over the 16 conv2 taps so that
    # patch lanes (tap, conv1-tap) -> output lanes (tap, channel) in one dot.
    w1_mat = jnp.transpose(p["c1_w"], (2, 3, 1, 0)).reshape(_K1, _C1)
    w1bd = jnp.kron(jnp.eye(_T2, dtype=f32), w1_mat.astype(f32))    # (576, 128)

    # conv2 weight as (taps*cin, cout) = (128, 16); rows match conv1 out lanes.
    w2r = jnp.transpose(p["c2_w"], (2, 3, 1, 0)).reshape(_T2 * _C1, _C2)

    w1t = p["fc_c1_w"].T                                            # (352, 128)
    # per-pixel head weights: w1i[s, c2, :] = fc_c1_w.T[c2*16 + s, :]
    w1i = w1t[:256].reshape(_C2, _NPIX, 128).transpose(1, 0, 2)

    wb = jnp.zeros((6, 96), f32)
    wb = wb.at[0:2, 0:32].set(p["fc_vel_w"].T)
    wb = wb.at[2:4, 32:64].set(p["fc_goal_w"].T)
    wb = wb.at[4:6, 64:96].set(p["fc_action_w"].T)
    bb = jnp.concatenate([p["fc_vel_b"], p["fc_goal_b"],
                          p["fc_action_b"]]).reshape(1, 96)

    return dict(
        w1=w1bd.astype(bf16),
        s1=jnp.tile(s1, _T2).reshape(1, _NC),       # BN1 over lanes (tap, c1)
        t1=jnp.tile(t1, _T2).reshape(1, _NC),
        w2=w2r.astype(bf16),
        s2=s2.reshape(1, _C2), t2=t2.reshape(1, _C2),
        wb=wb.astype(bf16), bb=bb,
        w1i=w1i.astype(bf16), w1v=w1t[256:352].astype(bf16),
        b1=p["fc_c1_b"].reshape(1, -1),
        w2h=p["fc_c2_w"].T.astype(bf16), b2h=p["fc_c2_b"].reshape(1, -1),
        w3=p["fc_actor_w"].T.astype(bf16), b3=p["fc_actor_b"].reshape(1, -1),
    )


def cnn_critic_v3_forward(image, vel, goal, action, params):
    if image.ndim == 3:                      # torch: unsqueeze channel dim
        image = image[:, None, :, :]
    b, cin, h, w = image.shape
    assert (cin, h, w) == (1, 112, 112), "CNNCriticV3 expects 1x112x112 images"

    hp = _prep_params(params)

    # Lane-packed, pool-slotted im2col of BOTH conv layers, batch-outermost:
    # row (d1, d2, pixel) / lane (conv2 tap, conv1 tap) reads
    # image[b, 24*py+12*dy2+6*i2+3*dy1+ki, 24*px+12*dx2+6*j2+3*dx1+kj].
    idx = _dup_index()
    assert int(idx.min()) >= 0 and int(idx.max()) < 112   # gather provably in-bounds
    img = image[:, 0].astype(jnp.bfloat16)                        # (b, 112, 112)
    g = jnp.take(img, jnp.asarray(idx), axis=1, mode="clip")      # (b, 384, 112)
    g = jnp.take(g, jnp.asarray(idx), axis=2, mode="clip")        # (b, 384, 384)
    # axes: (b, py, dy2, i2, dy1, ki, px, dx2, j2, dx1, kj)
    g = g.reshape(b, 4, 2, 4, 2, 6, 4, 2, 4, 2, 6)
    # -> (b, dy1, dx1, dy2, dx2, py, px, i2, j2, ki, kj)
    g = jnp.transpose(g, (0, 4, 9, 2, 7, 1, 6, 3, 8, 5, 10))
    patches = g.reshape(b, _ROWS, _KP)                            # (b, 256, 576) bf16

    vga = jnp.concatenate([vel, goal, action], axis=1)[:, None, :]  # (b, 1, 6)
    return _critic_call(patches, vga.astype(jnp.bfloat16), hp, b)


# -------------------------- deterministic parameters -------------------------

def init_params(key):
    keys = iter(jax.random.split(key, 24))
    n = lambda shape, s=0.1: s * jax.random.normal(next(keys), shape, jnp.float32)
    p = {}
    # conv1: Conv2d(1, 8, 6, stride=3) + BatchNorm2d(8)
    p["c1_w"] = n((8, 1, 6, 6)); p["c1_b"] = n((8,))
    p["bn1_g"] = 1.0 + n((8,)); p["bn1_b"] = n((8,))
    p["bn1_m"] = n((8,)); p["bn1_v"] = 1.0 + jnp.abs(n((8,)))
    # conv2: Conv2d(8, 16, 4, stride=2) + BatchNorm2d(16)
    p["c2_w"] = n((16, 8, 4, 4)); p["c2_b"] = n((16,))
    p["bn2_g"] = 1.0 + n((16,)); p["bn2_b"] = n((16,))
    p["bn2_m"] = n((16,)); p["bn2_v"] = 1.0 + jnp.abs(n((16,)))
    # small FC branches (PyTorch layout: (out, in))
    p["fc_vel_w"] = n((32, 2)); p["fc_vel_b"] = n((32,))
    p["fc_goal_w"] = n((32, 2)); p["fc_goal_b"] = n((32,))
    p["fc_action_w"] = n((32, 2)); p["fc_action_b"] = n((32,))
    # fc_combined: Linear(352, 128), Linear(128, 64)
    p["fc_c1_w"] = n((128, 352)); p["fc_c1_b"] = n((128,))
    p["fc_c2_w"] = n((64, 128)); p["fc_c2_b"] = n((64,))
    # fc_actor: Linear(64, 2)
    p["fc_actor_w"] = n((2, 64)); p["fc_actor_b"] = n((2,))
    return p


# ------------------------- pure-JAX reference (check) ------------------------

def reference_forward(image, vel, goal, action, p):
    if image.ndim == 3:
        image = image[:, None, :, :]

    def block(x, w, b, g, beta, m, v, stride):
        y = lax.conv_general_dilated(x, w, (stride, stride), "VALID",
                                     dimension_numbers=("NCHW", "OIHW", "NCHW"))
        y = y + b[None, :, None, None]
        s = (g / jnp.sqrt(v + _EPS))[None, :, None, None]
        y = (y - m[None, :, None, None]) * s + beta[None, :, None, None]
        y = jnp.maximum(y, 0.0)
        return lax.reduce_window(y, -jnp.inf, lax.max,
                                 (1, 1, 2, 2), (1, 1, 2, 2), "VALID")

    x = block(image, p["c1_w"], p["c1_b"], p["bn1_g"], p["bn1_b"],
              p["bn1_m"], p["bn1_v"], 3)
    x = block(x, p["c2_w"], p["c2_b"], p["bn2_g"], p["bn2_b"],
              p["bn2_m"], p["bn2_v"], 2)
    flat = x.reshape(x.shape[0], -1)
    relu = lambda z: jnp.maximum(z, 0.0)
    vh = relu(vel @ p["fc_vel_w"].T + p["fc_vel_b"])
    gh = relu(goal @ p["fc_goal_w"].T + p["fc_goal_b"])
    ah = relu(action @ p["fc_action_w"].T + p["fc_action_b"])
    comb = jnp.concatenate([flat, vh, gh, ah], axis=1)
    h1 = relu(comb @ p["fc_c1_w"].T + p["fc_c1_b"])
    h2 = relu(h1 @ p["fc_c2_w"].T + p["fc_c2_b"])
    return h2 @ p["fc_actor_w"].T + p["fc_actor_b"]


# ----------------------------------- main -------------------------------------

if __name__ == "__main__":
    key = jax.random.PRNGKey(0)
    k_img, k_vel, k_goal, k_act, k_par = jax.random.split(key, 5)

    # 112x112 input: conv1 -> 36, pool -> 18, conv2 -> 8, pool -> 4; 16*4*4 = 256
    B, H, W = 2, 112, 112
    image = jax.random.normal(k_img, (B, H, W), jnp.float32)   # 3-D -> unsqueezed
    vel = jax.random.normal(k_vel, (B, 2), jnp.float32)
    goal = jax.random.normal(k_goal, (B, 2), jnp.float32)
    action = jax.random.normal(k_act, (B, 2), jnp.float32)
    params = init_params(k_par)

    fwd = jax.jit(cnn_critic_v3_forward)
    out = jax.block_until_ready(fwd(image, vel, goal, action, params))
    assert out.shape == (B, 2), out.shape

    ref = jax.block_until_ready(
        jax.jit(reference_forward)(image, vel, goal, action, params))
    assert jnp.allclose(out, ref, rtol=5e-2, atol=5e-2), (out, ref)

    print("KERNEL_OK")
</pallas_src>

<mosaic_0001>
module attributes {stable_mosaic.version = 11 : i64} {
  func.func @_critic_kernel(%arg0: i32, %arg1: memref<1x256x576xbf16, #tpu.memory_space<vmem>>, %arg2: memref<1x1x6xbf16, #tpu.memory_space<vmem>>, %arg3: memref<576x128xbf16, #tpu.memory_space<vmem>>, %arg4: memref<1x128xf32, #tpu.memory_space<vmem>>, %arg5: memref<1x128xf32, #tpu.memory_space<vmem>>, %arg6: memref<128x16xbf16, #tpu.memory_space<vmem>>, %arg7: memref<1x16xf32, #tpu.memory_space<vmem>>, %arg8: memref<1x16xf32, #tpu.memory_space<vmem>>, %arg9: memref<6x96xbf16, #tpu.memory_space<vmem>>, %arg10: memref<1x96xf32, #tpu.memory_space<vmem>>, %arg11: memref<16x16x128xbf16, #tpu.memory_space<vmem>>, %arg12: memref<96x128xbf16, #tpu.memory_space<vmem>>, %arg13: memref<1x128xf32, #tpu.memory_space<vmem>>, %arg14: memref<128x64xbf16, #tpu.memory_space<vmem>>, %arg15: memref<1x64xf32, #tpu.memory_space<vmem>>, %arg16: memref<64x2xbf16, #tpu.memory_space<vmem>>, %arg17: memref<1x2xf32, #tpu.memory_space<vmem>>, %arg18: memref<1x1x2xf32, #tpu.memory_space<vmem>>) attributes {dimension_semantics = [#tpu.dimension_semantics<parallel>], iteration_bounds = array<i64: 2>, scalar_prefetch = 0 : i64, scratch_operands = 0 : i64, tpu.core_type = #tpu.core_type<tc>, window_params = [{transform_indices = @transform_0, window_bounds = array<i64: 1, 256, 576>}, {transform_indices = @transform_1, window_bounds = array<i64: 1, 1, 6>}, {pipeline_mode = #tpu.pipeline_mode<synchronous>, transform_indices = @transform_2, window_bounds = array<i64: 576, 128>}, {pipeline_mode = #tpu.pipeline_mode<synchronous>, transform_indices = @transform_3, window_bounds = array<i64: 1, 128>}, {pipeline_mode = #tpu.pipeline_mode<synchronous>, transform_indices = @transform_4, window_bounds = array<i64: 1, 128>}, {pipeline_mode = #tpu.pipeline_mode<synchronous>, transform_indices = @transform_5, window_bounds = array<i64: 128, 16>}, {pipeline_mode = #tpu.pipeline_mode<synchronous>, transform_indices = @transform_6, window_bounds = array<i64: 1, 16>}, {pipeline_mode = #tpu.pipeline_mode<synchronous>, transform_indices = @transform_7, window_bounds = array<i64: 1, 16>}, {pipeline_mode = #tpu.pipeline_mode<synchronous>, transform_indices = @transform_8, window_bounds = array<i64: 6, 96>}, {pipeline_mode = #tpu.pipeline_mode<synchronous>, transform_indices = @transform_9, window_bounds = array<i64: 1, 96>}, {pipeline_mode = #tpu.pipeline_mode<synchronous>, transform_indices = @transform_10, window_bounds = array<i64: 16, 16, 128>}, {pipeline_mode = #tpu.pipeline_mode<synchronous>, transform_indices = @transform_11, window_bounds = array<i64: 96, 128>}, {pipeline_mode = #tpu.pipeline_mode<synchronous>, transform_indices = @transform_12, window_bounds = array<i64: 1, 128>}, {pipeline_mode = #tpu.pipeline_mode<synchronous>, transform_indices = @transform_13, window_bounds = array<i64: 128, 64>}, {pipeline_mode = #tpu.pipeline_mode<synchronous>, transform_indices = @transform_14, window_bounds = array<i64: 1, 64>}, {pipeline_mode = #tpu.pipeline_mode<synchronous>, transform_indices = @transform_15, window_bounds = array<i64: 64, 2>}, {pipeline_mode = #tpu.pipeline_mode<synchronous>, transform_indices = @transform_16, window_bounds = array<i64: 1, 2>}, {transform_indices = @transform_17, window_bounds = array<i64: 1, 1, 2>}]} {
    %c0 = arith.constant 0 : index
    %c0_0 = arith.constant 0 : index
    %c0_1 = arith.constant 0 : index
    %0 = vector.load %arg1[%c0, %c0_0, %c0_1] : memref<1x256x576xbf16, #tpu.memory_space<vmem>>, vector<1x256x576xbf16>
    %1 = vector.shape_cast %0 : vector<1x256x576xbf16> to vector<256x576xbf16>
    %c0_2 = arith.constant 0 : index
    %c0_3 = arith.constant 0 : index
    %2 = vector.load %arg3[%c0_2, %c0_3] : memref<576x128xbf16, #tpu.memory_space<vmem>>, vector<576x128xbf16>
    %cst = arith.constant dense<0.000000e+00> : vector<256x128xf32>
    %3 = tpu.matmul %1, %2, %cst {dimension_numbers = #tpu.dot_dimension_numbers<[1], [0], [0], [1], [0, 0, 1, 1], [], []>} : vector<256x576xbf16>, vector<576x128xbf16>, vector<256x128xf32> -> vector<256x128xf32>
    %c0_4 = arith.constant 0 : index
    %c0_5 = arith.constant 0 : index
    %4 = vector.load %arg4[%c0_4, %c0_5] : memref<1x128xf32, #tpu.memory_space<vmem>>, vector<1x128xf32>
    %5 = vector.broadcast %4 : vector<1x128xf32> to vector<256x128xf32>
    %6 = arith.mulf %3, %5 : vector<256x128xf32>
    %c0_6 = arith.constant 0 : index
    %c0_7 = arith.constant 0 : index
    %7 = vector.load %arg5[%c0_6, %c0_7] : memref<1x128xf32, #tpu.memory_space<vmem>>, vector<1x128xf32>
    %8 = vector.broadcast %7 : vector<1x128xf32> to vector<256x128xf32>
    %9 = arith.addf %6, %8 : vector<256x128xf32>
    %10 = vector.extract_strided_slice %9 {offsets = [0, 0], sizes = [64, 128], strides = [1, 1]} : vector<256x128xf32> to vector<64x128xf32>
    %11 = vector.extract_strided_slice %9 {offsets = [64, 0], sizes = [64, 128], strides = [1, 1]} : vector<256x128xf32> to vector<64x128xf32>
    %12 = arith.maximumf %10, %11 : vector<64x128xf32>
    %13 = vector.extract_strided_slice %9 {offsets = [128, 0], sizes = [64, 128], strides = [1, 1]} : vector<256x128xf32> to vector<64x128xf32>
    %14 = vector.extract_strided_slice %9 {offsets = [192, 0], sizes = [64, 128], strides = [1, 1]} : vector<256x128xf32> to vector<64x128xf32>
    %15 = arith.maximumf %13, %14 : vector<64x128xf32>
    %16 = arith.maximumf %12, %15 : vector<64x128xf32>
    %cst_8 = arith.constant 0.000000e+00 : f32
    %17 = vector.broadcast %cst_8 : f32 to vector<64x128xf32>
    %18 = arith.maximumf %16, %17 : vector<64x128xf32>
    %19 = arith.truncf %18 : vector<64x128xf32> to vector<64x128xbf16>
    %c0_9 = arith.constant 0 : index
    %c0_10 = arith.constant 0 : index
    %20 = vector.load %arg6[%c0_9, %c0_10] : memref<128x16xbf16, #tpu.memory_space<vmem>>, vector<128x16xbf16>
    %cst_11 = arith.constant dense<0.000000e+00> : vector<64x16xf32>
    %21 = tpu.matmul %19, %20, %cst_11 {dimension_numbers = #tpu.dot_dimension_numbers<[1], [0], [0], [1], [0, 0, 1, 1], [], []>} : vector<64x128xbf16>, vector<128x16xbf16>, vector<64x16xf32> -> vector<64x16xf32>
    %c0_12 = arith.constant 0 : index
    %c0_13 = arith.constant 0 : index
    %22 = vector.load %arg7[%c0_12, %c0_13] : memref<1x16xf32, #tpu.memory_space<vmem>>, vector<1x16xf32>
    %23 = vector.broadcast %22 : vector<1x16xf32> to vector<64x16xf32>
    %24 = arith.mulf %21, %23 : vector<64x16xf32>
    %c0_14 = arith.constant 0 : index
    %c0_15 = arith.constant 0 : index
    %25 = vector.load %arg8[%c0_14, %c0_15] : memref<1x16xf32, #tpu.memory_space<vmem>>, vector<1x16xf32>
    %26 = vector.broadcast %25 : vector<1x16xf32> to vector<64x16xf32>
    %27 = arith.addf %24, %26 : vector<64x16xf32>
    %28 = vector.extract_strided_slice %27 {offsets = [0, 0], sizes = [16, 16], strides = [1, 1]} : vector<64x16xf32> to vector<16x16xf32>
    %29 = vector.extract_strided_slice %27 {offsets = [16, 0], sizes = [16, 16], strides = [1, 1]} : vector<64x16xf32> to vector<16x16xf32>
    %30 = arith.maximumf %28, %29 : vector<16x16xf32>
    %31 = vector.extract_strided_slice %27 {offsets = [32, 0], sizes = [16, 16], strides = [1, 1]} : vector<64x16xf32> to vector<16x16xf32>
    %32 = vector.extract_strided_slice %27 {offsets = [48, 0], sizes = [16, 16], strides = [1, 1]} : vector<64x16xf32> to vector<16x16xf32>
    %33 = arith.maximumf %31, %32 : vector<16x16xf32>
    %34 = arith.maximumf %30, %33 : vector<16x16xf32>
    %cst_16 = arith.constant 0.000000e+00 : f32
    %35 = vector.broadcast %cst_16 : f32 to vector<16x16xf32>
    %36 = arith.maximumf %34, %35 : vector<16x16xf32>
    %37 = arith.truncf %36 : vector<16x16xf32> to vector<16x16xbf16>
    %38 = vector.extract_strided_slice %37 {offsets = [0, 0], sizes = [1, 16], strides = [1, 1]} : vector<16x16xbf16> to vector<1x16xbf16>
    %c0_17 = arith.constant 0 : index
    %c0_18 = arith.constant 0 : index
    %c0_19 = arith.constant 0 : index
    %39 = vector.load %arg11[%c0_17, %c0_18, %c0_19] : memref<16x16x128xbf16, #tpu.memory_space<vmem>>, vector<1x16x128xbf16>
    %40 = vector.shape_cast %39 : vector<1x16x128xbf16> to vector<16x128xbf16>
    %cst_20 = arith.constant dense<0.000000e+00> : vector<1x128xf32>
    %41 = tpu.matmul %38, %40, %cst_20 {dimension_numbers = #tpu.dot_dimension_numbers<[1], [0], [0], [1], [0, 0, 1, 1], [], []>} : vector<1x16xbf16>, vector<16x128xbf16>, vector<1x128xf32> -> vector<1x128xf32>
    %42 = vector.extract_strided_slice %37 {offsets = [1, 0], sizes = [1, 16], strides = [1, 1]} : vector<16x16xbf16> to vector<1x16xbf16>
    %c1 = arith.constant 1 : index
    %c0_21 = arith.constant 0 : index
    %c0_22 = arith.constant 0 : index
    %43 = vector.load %arg11[%c1, %c0_21, %c0_22] : memref<16x16x128xbf16, #tpu.memory_space<vmem>>, vector<1x16x128xbf16>
    %44 = vector.shape_cast %43 : vector<1x16x128xbf16> to vector<16x128xbf16>
    %cst_23 = arith.constant dense<0.000000e+00> : vector<1x128xf32>
    %45 = tpu.matmul %42, %44, %cst_23 {dimension_numbers = #tpu.dot_dimension_numbers<[1], [0], [0], [1], [0, 0, 1, 1], [], []>} : vector<1x16xbf16>, vector<16x128xbf16>, vector<1x128xf32> -> vector<1x128xf32>
    %46 = vector.extract_strided_slice %37 {offsets = [2, 0], sizes = [1, 16], strides = [1, 1]} : vector<16x16xbf16> to vector<1x16xbf16>
    %c2 = arith.constant 2 : index
    %c0_24 = arith.constant 0 : index
    %c0_25 = arith.constant 0 : index
    %47 = vector.load %arg11[%c2, %c0_24, %c0_25] : memref<16x16x128xbf16, #tpu.memory_space<vmem>>, vector<1x16x128xbf16>
    %48 = vector.shape_cast %47 : vector<1x16x128xbf16> to vector<16x128xbf16>
    %cst_26 = arith.constant dense<0.000000e+00> : vector<1x128xf32>
    %49 = tpu.matmul %46, %48, %cst_26 {dimension_numbers = #tpu.dot_dimension_numbers<[1], [0], [0], [1], [0, 0, 1, 1], [], []>} : vector<1x16xbf16>, vector<16x128xbf16>, vector<1x128xf32> -> vector<1x128xf32>
    %50 = vector.extract_strided_slice %37 {offsets = [3, 0], sizes = [1, 16], strides = [1, 1]} : vector<16x16xbf16> to vector<1x16xbf16>
    %c3 = arith.constant 3 : index
    %c0_27 = arith.constant 0 : index
    %c0_28 = arith.constant 0 : index
    %51 = vector.load %arg11[%c3, %c0_27, %c0_28] : memref<16x16x128xbf16, #tpu.memory_space<vmem>>, vector<1x16x128xbf16>
    %52 = vector.shape_cast %51 : vector<1x16x128xbf16> to vector<16x128xbf16>
    %cst_29 = arith.constant dense<0.000000e+00> : vector<1x128xf32>
    %53 = tpu.matmul %50, %52, %cst_29 {dimension_numbers = #tpu.dot_dimension_numbers<[1], [0], [0], [1], [0, 0, 1, 1], [], []>} : vector<1x16xbf16>, vector<16x128xbf16>, vector<1x128xf32> -> vector<1x128xf32>
    %54 = vector.extract_strided_slice %37 {offsets = [4, 0], sizes = [1, 16], strides = [1, 1]} : vector<16x16xbf16> to vector<1x16xbf16>
    %c4 = arith.constant 4 : index
    %c0_30 = arith.constant 0 : index
    %c0_31 = arith.constant 0 : index
    %55 = vector.load %arg11[%c4, %c0_30, %c0_31] : memref<16x16x128xbf16, #tpu.memory_space<vmem>>, vector<1x16x128xbf16>
    %56 = vector.shape_cast %55 : vector<1x16x128xbf16> to vector<16x128xbf16>
    %cst_32 = arith.constant dense<0.000000e+00> : vector<1x128xf32>
    %57 = tpu.matmul %54, %56, %cst_32 {dimension_numbers = #tpu.dot_dimension_numbers<[1], [0], [0], [1], [0, 0, 1, 1], [], []>} : vector<1x16xbf16>, vector<16x128xbf16>, vector<1x128xf32> -> vector<1x128xf32>
    %58 = vector.extract_strided_slice %37 {offsets = [5, 0], sizes = [1, 16], strides = [1, 1]} : vector<16x16xbf16> to vector<1x16xbf16>
    %c5 = arith.constant 5 : index
    %c0_33 = arith.constant 0 : index
    %c0_34 = arith.constant 0 : index
    %59 = vector.load %arg11[%c5, %c0_33, %c0_34] : memref<16x16x128xbf16, #tpu.memory_space<vmem>>, vector<1x16x128xbf16>
    %60 = vector.shape_cast %59 : vector<1x16x128xbf16> to vector<16x128xbf16>
    %cst_35 = arith.constant dense<0.000000e+00> : vector<1x128xf32>
    %61 = tpu.matmul %58, %60, %cst_35 {dimension_numbers = #tpu.dot_dimension_numbers<[1], [0], [0], [1], [0, 0, 1, 1], [], []>} : vector<1x16xbf16>, vector<16x128xbf16>, vector<1x128xf32> -> vector<1x128xf32>
    %62 = vector.extract_strided_slice %37 {offsets = [6, 0], sizes = [1, 16], strides = [1, 1]} : vector<16x16xbf16> to vector<1x16xbf16>
    %c6 = arith.constant 6 : index
    %c0_36 = arith.constant 0 : index
    %c0_37 = arith.constant 0 : index
    %63 = vector.load %arg11[%c6, %c0_36, %c0_37] : memref<16x16x128xbf16, #tpu.memory_space<vmem>>, vector<1x16x128xbf16>
    %64 = vector.shape_cast %63 : vector<1x16x128xbf16> to vector<16x128xbf16>
    %cst_38 = arith.constant dense<0.000000e+00> : vector<1x128xf32>
    %65 = tpu.matmul %62, %64, %cst_38 {dimension_numbers = #tpu.dot_dimension_numbers<[1], [0], [0], [1], [0, 0, 1, 1], [], []>} : vector<1x16xbf16>, vector<16x128xbf16>, vector<1x128xf32> -> vector<1x128xf32>
    %66 = vector.extract_strided_slice %37 {offsets = [7, 0], sizes = [1, 16], strides = [1, 1]} : vector<16x16xbf16> to vector<1x16xbf16>
    %c7 = arith.constant 7 : index
    %c0_39 = arith.constant 0 : index
    %c0_40 = arith.constant 0 : index
    %67 = vector.load %arg11[%c7, %c0_39, %c0_40] : memref<16x16x128xbf16, #tpu.memory_space<vmem>>, vector<1x16x128xbf16>
    %68 = vector.shape_cast %67 : vector<1x16x128xbf16> to vector<16x128xbf16>
    %cst_41 = arith.constant dense<0.000000e+00> : vector<1x128xf32>
    %69 = tpu.matmul %66, %68, %cst_41 {dimension_numbers = #tpu.dot_dimension_numbers<[1], [0], [0], [1], [0, 0, 1, 1], [], []>} : vector<1x16xbf16>, vector<16x128xbf16>, vector<1x128xf32> -> vector<1x128xf32>
    %70 = vector.extract_strided_slice %37 {offsets = [8, 0], sizes = [1, 16], strides = [1, 1]} : vector<16x16xbf16> to vector<1x16xbf16>
    %c8 = arith.constant 8 : index
    %c0_42 = arith.constant 0 : index
    %c0_43 = arith.constant 0 : index
    %71 = vector.load %arg11[%c8, %c0_42, %c0_43] : memref<16x16x128xbf16, #tpu.memory_space<vmem>>, vector<1x16x128xbf16>
    %72 = vector.shape_cast %71 : vector<1x16x128xbf16> to vector<16x128xbf16>
    %cst_44 = arith.constant dense<0.000000e+00> : vector<1x128xf32>
    %73 = tpu.matmul %70, %72, %cst_44 {dimension_numbers = #tpu.dot_dimension_numbers<[1], [0], [0], [1], [0, 0, 1, 1], [], []>} : vector<1x16xbf16>, vector<16x128xbf16>, vector<1x128xf32> -> vector<1x128xf32>
    %74 = vector.extract_strided_slice %37 {offsets = [9, 0], sizes = [1, 16], strides = [1, 1]} : vector<16x16xbf16> to vector<1x16xbf16>
    %c9 = arith.constant 9 : index
    %c0_45 = arith.constant 0 : index
    %c0_46 = arith.constant 0 : index
    %75 = vector.load %arg11[%c9, %c0_45, %c0_46] : memref<16x16x128xbf16, #tpu.memory_space<vmem>>, vector<1x16x128xbf16>
    %76 = vector.shape_cast %75 : vector<1x16x128xbf16> to vector<16x128xbf16>
    %cst_47 = arith.constant dense<0.000000e+00> : vector<1x128xf32>
    %77 = tpu.matmul %74, %76, %cst_47 {dimension_numbers = #tpu.dot_dimension_numbers<[1], [0], [0], [1], [0, 0, 1, 1], [], []>} : vector<1x16xbf16>, vector<16x128xbf16>, vector<1x128xf32> -> vector<1x128xf32>
    %78 = vector.extract_strided_slice %37 {offsets = [10, 0], sizes = [1, 16], strides = [1, 1]} : vector<16x16xbf16> to vector<1x16xbf16>
    %c10 = arith.constant 10 : index
    %c0_48 = arith.constant 0 : index
    %c0_49 = arith.constant 0 : index
    %79 = vector.load %arg11[%c10, %c0_48, %c0_49] : memref<16x16x128xbf16, #tpu.memory_space<vmem>>, vector<1x16x128xbf16>
    %80 = vector.shape_cast %79 : vector<1x16x128xbf16> to vector<16x128xbf16>
    %cst_50 = arith.constant dense<0.000000e+00> : vector<1x128xf32>
    %81 = tpu.matmul %78, %80, %cst_50 {dimension_numbers = #tpu.dot_dimension_numbers<[1], [0], [0], [1], [0, 0, 1, 1], [], []>} : vector<1x16xbf16>, vector<16x128xbf16>, vector<1x128xf32> -> vector<1x128xf32>
    %82 = vector.extract_strided_slice %37 {offsets = [11, 0], sizes = [1, 16], strides = [1, 1]} : vector<16x16xbf16> to vector<1x16xbf16>
    %c11 = arith.constant 11 : index
    %c0_51 = arith.constant 0 : index
    %c0_52 = arith.constant 0 : index
    %83 = vector.load %arg11[%c11, %c0_51, %c0_52] : memref<16x16x128xbf16, #tpu.memory_space<vmem>>, vector<1x16x128xbf16>
    %84 = vector.shape_cast %83 : vector<1x16x128xbf16> to vector<16x128xbf16>
    %cst_53 = arith.constant dense<0.000000e+00> : vector<1x128xf32>
    %85 = tpu.matmul %82, %84, %cst_53 {dimension_numbers = #tpu.dot_dimension_numbers<[1], [0], [0], [1], [0, 0, 1, 1], [], []>} : vector<1x16xbf16>, vector<16x128xbf16>, vector<1x128xf32> -> vector<1x128xf32>
    %86 = vector.extract_strided_slice %37 {offsets = [12, 0], sizes = [1, 16], strides = [1, 1]} : vector<16x16xbf16> to vector<1x16xbf16>
    %c12 = arith.constant 12 : index
    %c0_54 = arith.constant 0 : index
    %c0_55 = arith.constant 0 : index
    %87 = vector.load %arg11[%c12, %c0_54, %c0_55] : memref<16x16x128xbf16, #tpu.memory_space<vmem>>, vector<1x16x128xbf16>
    %88 = vector.shape_cast %87 : vector<1x16x128xbf16> to vector<16x128xbf16>
    %cst_56 = arith.constant dense<0.000000e+00> : vector<1x128xf32>
    %89 = tpu.matmul %86, %88, %cst_56 {dimension_numbers = #tpu.dot_dimension_numbers<[1], [0], [0], [1], [0, 0, 1, 1], [], []>} : vector<1x16xbf16>, vector<16x128xbf16>, vector<1x128xf32> -> vector<1x128xf32>
    %90 = vector.extract_strided_slice %37 {offsets = [13, 0], sizes = [1, 16], strides = [1, 1]} : vector<16x16xbf16> to vector<1x16xbf16>
    %c13 = arith.constant 13 : index
    %c0_57 = arith.constant 0 : index
    %c0_58 = arith.constant 0 : index
    %91 = vector.load %arg11[%c13, %c0_57, %c0_58] : memref<16x16x128xbf16, #tpu.memory_space<vmem>>, vector<1x16x128xbf16>
    %92 = vector.shape_cast %91 : vector<1x16x128xbf16> to vector<16x128xbf16>
    %cst_59 = arith.constant dense<0.000000e+00> : vector<1x128xf32>
    %93 = tpu.matmul %90, %92, %cst_59 {dimension_numbers = #tpu.dot_dimension_numbers<[1], [0], [0], [1], [0, 0, 1, 1], [], []>} : vector<1x16xbf16>, vector<16x128xbf16>, vector<1x128xf32> -> vector<1x128xf32>
    %94 = vector.extract_strided_slice %37 {offsets = [14, 0], sizes = [1, 16], strides = [1, 1]} : vector<16x16xbf16> to vector<1x16xbf16>
    %c14 = arith.constant 14 : index
    %c0_60 = arith.constant 0 : index
    %c0_61 = arith.constant 0 : index
    %95 = vector.load %arg11[%c14, %c0_60, %c0_61] : memref<16x16x128xbf16, #tpu.memory_space<vmem>>, vector<1x16x128xbf16>
    %96 = vector.shape_cast %95 : vector<1x16x128xbf16> to vector<16x128xbf16>
    %cst_62 = arith.constant dense<0.000000e+00> : vector<1x128xf32>
    %97 = tpu.matmul %94, %96, %cst_62 {dimension_numbers = #tpu.dot_dimension_numbers<[1], [0], [0], [1], [0, 0, 1, 1], [], []>} : vector<1x16xbf16>, vector<16x128xbf16>, vector<1x128xf32> -> vector<1x128xf32>
    %98 = vector.extract_strided_slice %37 {offsets = [15, 0], sizes = [1, 16], strides = [1, 1]} : vector<16x16xbf16> to vector<1x16xbf16>
    %c15 = arith.constant 15 : index
    %c0_63 = arith.constant 0 : index
    %c0_64 = arith.constant 0 : index
    %99 = vector.load %arg11[%c15, %c0_63, %c0_64] : memref<16x16x128xbf16, #tpu.memory_space<vmem>>, vector<1x16x128xbf16>
    %100 = vector.shape_cast %99 : vector<1x16x128xbf16> to vector<16x128xbf16>
    %cst_65 = arith.constant dense<0.000000e+00> : vector<1x128xf32>
    %101 = tpu.matmul %98, %100, %cst_65 {dimension_numbers = #tpu.dot_dimension_numbers<[1], [0], [0], [1], [0, 0, 1, 1], [], []>} : vector<1x16xbf16>, vector<16x128xbf16>, vector<1x128xf32> -> vector<1x128xf32>
    %102 = arith.addf %41, %45 : vector<1x128xf32>
    %103 = arith.addf %49, %53 : vector<1x128xf32>
    %104 = arith.addf %57, %61 : vector<1x128xf32>
    %105 = arith.addf %65, %69 : vector<1x128xf32>
    %106 = arith.addf %73, %77 : vector<1x128xf32>
    %107 = arith.addf %81, %85 : vector<1x128xf32>
    %108 = arith.addf %89, %93 : vector<1x128xf32>
    %109 = arith.addf %97, %101 : vector<1x128xf32>
    %110 = arith.addf %102, %103 : vector<1x128xf32>
    %111 = arith.addf %104, %105 : vector<1x128xf32>
    %112 = arith.addf %106, %107 : vector<1x128xf32>
    %113 = arith.addf %108, %109 : vector<1x128xf32>
    %114 = arith.addf %110, %111 : vector<1x128xf32>
    %115 = arith.addf %112, %113 : vector<1x128xf32>
    %116 = arith.addf %114, %115 : vector<1x128xf32>
    %c0_66 = arith.constant 0 : index
    %c0_67 = arith.constant 0 : index
    %c0_68 = arith.constant 0 : index
    %117 = vector.load %arg2[%c0_66, %c0_67, %c0_68] : memref<1x1x6xbf16, #tpu.memory_space<vmem>>, vector<1x1x6xbf16>
    %118 = vector.shape_cast %117 : vector<1x1x6xbf16> to vector<1x6xbf16>
    %c0_69 = arith.constant 0 : index
    %c0_70 = arith.constant 0 : index
    %119 = vector.load %arg9[%c0_69, %c0_70] : memref<6x96xbf16, #tpu.memory_space<vmem>>, vector<6x96xbf16>
    %cst_71 = arith.constant dense<0.000000e+00> : vector<1x96xf32>
    %120 = tpu.matmul %118, %119, %cst_71 {dimension_numbers = #tpu.dot_dimension_numbers<[1], [0], [0], [1], [0, 0, 1, 1], [], []>} : vector<1x6xbf16>, vector<6x96xbf16>, vector<1x96xf32> -> vector<1x96xf32>
    %c0_72 = arith.constant 0 : index
    %c0_73 = arith.constant 0 : index
    %121 = vector.load %arg10[%c0_72, %c0_73] : memref<1x96xf32, #tpu.memory_space<vmem>>, vector<1x96xf32>
    %122 = arith.addf %120, %121 : vector<1x96xf32>
    %cst_74 = arith.constant 0.000000e+00 : f32
    %123 = vector.broadcast %cst_74 : f32 to vector<1x96xf32>
    %124 = arith.maximumf %122, %123 : vector<1x96xf32>
    %125 = arith.truncf %124 : vector<1x96xf32> to vector<1x96xbf16>
    %c0_75 = arith.constant 0 : index
    %c0_76 = arith.constant 0 : index
    %126 = vector.load %arg12[%c0_75, %c0_76] : memref<96x128xbf16, #tpu.memory_space<vmem>>, vector<96x128xbf16>
    %cst_77 = arith.constant dense<0.000000e+00> : vector<1x128xf32>
    %127 = tpu.matmul %125, %126, %cst_77 {dimension_numbers = #tpu.dot_dimension_numbers<[1], [0], [0], [1], [0, 0, 1, 1], [], []>} : vector<1x96xbf16>, vector<96x128xbf16>, vector<1x128xf32> -> vector<1x128xf32>
    %128 = arith.addf %116, %127 : vector<1x128xf32>
    %c0_78 = arith.constant 0 : index
    %c0_79 = arith.constant 0 : index
    %129 = vector.load %arg13[%c0_78, %c0_79] : memref<1x128xf32, #tpu.memory_space<vmem>>, vector<1x128xf32>
    %130 = arith.addf %128, %129 : vector<1x128xf32>
    %cst_80 = arith.constant 0.000000e+00 : f32
    %131 = vector.broadcast %cst_80 : f32 to vector<1x128xf32>
    %132 = arith.maximumf %130, %131 : vector<1x128xf32>
    %133 = arith.truncf %132 : vector<1x128xf32> to vector<1x128xbf16>
    %c0_81 = arith.constant 0 : index
    %c0_82 = arith.constant 0 : index
    %134 = vector.load %arg14[%c0_81, %c0_82] : memref<128x64xbf16, #tpu.memory_space<vmem>>, vector<128x64xbf16>
    %cst_83 = arith.constant dense<0.000000e+00> : vector<1x64xf32>
    %135 = tpu.matmul %133, %134, %cst_83 {dimension_numbers = #tpu.dot_dimension_numbers<[1], [0], [0], [1], [0, 0, 1, 1], [], []>} : vector<1x128xbf16>, vector<128x64xbf16>, vector<1x64xf32> -> vector<1x64xf32>
    %c0_84 = arith.constant 0 : index
    %c0_85 = arith.constant 0 : index
    %136 = vector.load %arg15[%c0_84, %c0_85] : memref<1x64xf32, #tpu.memory_space<vmem>>, vector<1x64xf32>
    %137 = arith.addf %135, %136 : vector<1x64xf32>
    %cst_86 = arith.constant 0.000000e+00 : f32
    %138 = vector.broadcast %cst_86 : f32 to vector<1x64xf32>
    %139 = arith.maximumf %137, %138 : vector<1x64xf32>
    %140 = arith.truncf %139 : vector<1x64xf32> to vector<1x64xbf16>
    %c0_87 = arith.constant 0 : index
    %c0_88 = arith.constant 0 : index
    %141 = vector.load %arg16[%c0_87, %c0_88] : memref<64x2xbf16, #tpu.memory_space<vmem>>, vector<64x2xbf16>
    %cst_89 = arith.constant dense<0.000000e+00> : vector<1x2xf32>
    %142 = tpu.matmul %140, %141, %cst_89 {dimension_numbers = #tpu.dot_dimension_numbers<[1], [0], [0], [1], [0, 0, 1, 1], [], []>} : vector<1x64xbf16>, vector<64x2xbf16>, vector<1x2xf32> -> vector<1x2xf32>
    %c0_90 = arith.constant 0 : index
    %c0_91 = arith.constant 0 : index
    %143 = vector.load %arg17[%c0_90, %c0_91] : memref<1x2xf32, #tpu.memory_space<vmem>>, vector<1x2xf32>
    %144 = arith.addf %142, %143 : vector<1x2xf32>
    %c0_92 = arith.constant 0 : index
    %c0_93 = arith.constant 0 : index
    %c0_94 = arith.constant 0 : index
    %145 = vector.load %arg18[%c0_92, %c0_93, %c0_94] : memref<1x1x2xf32, #tpu.memory_space<vmem>>, vector<1x1x2xf32>
    %146 = vector.shape_cast %145 : vector<1x1x2xf32> to vector<1x2xf32>
    %147 = vector.shape_cast %144 : vector<1x2xf32> to vector<1x1x2xf32>
    tpu.vector_store %arg18[%c0_92, %c0_93, %c0_94], %147 {strides = array<i32>} : memref<1x1x2xf32, #tpu.memory_space<vmem>>, vector<1x1x2xf32>,
    return
  }
  func.func @transform_0(%arg0: i32) -> (i32, i32, i32) {
    %c0_i32 = arith.constant 0 : i32
    %c0_i32_0 = arith.constant 0 : i32
    %c0_i32_1 = arith.constant 0 : i32
    return %arg0, %c0_i32, %c0_i32_0 : i32, i32, i32
  }
  func.func @transform_1(%arg0: i32) -> (i32, i32, i32) {
    %c0_i32 = arith.constant 0 : i32
    %c0_i32_0 = arith.constant 0 : i32
    %c0_i32_1 = arith.constant 0 : i32
    return %arg0, %c0_i32, %c0_i32_0 : i32, i32, i32
  }
  func.func @transform_2(%arg0: i32) -> (i32, i32) {
    %c0_i32 = arith.constant 0 : i32
    %c0_i32_0 = arith.constant 0 : i32
    %c0_i32_1 = arith.constant 0 : i32
    return %c0_i32, %c0_i32_0 : i32, i32
  }
  func.func @transform_3(%arg0: i32) -> (i32, i32) {
    %c0_i32 = arith.constant 0 : i32
    %c0_i32_0 = arith.constant 0 : i32
    %c0_i32_1 = arith.constant 0 : i32
    return %c0_i32, %c0_i32_0 : i32, i32
  }
  func.func @transform_4(%arg0: i32) -> (i32, i32) {
    %c0_i32 = arith.constant 0 : i32
    %c0_i32_0 = arith.constant 0 : i32
    %c0_i32_1 = arith.constant 0 : i32
    return %c0_i32, %c0_i32_0 : i32, i32
  }
  func.func @transform_5(%arg0: i32) -> (i32, i32) {
    %c0_i32 = arith.constant 0 : i32
    %c0_i32_0 = arith.constant 0 : i32
    %c0_i32_1 = arith.constant 0 : i32
    return %c0_i32, %c0_i32_0 : i32, i32
  }
  func.func @transform_6(%arg0: i32) -> (i32, i32) {
    %c0_i32 = arith.constant 0 : i32
    %c0_i32_0 = arith.constant 0 : i32
    %c0_i32_1 = arith.constant 0 : i32
    return %c0_i32, %c0_i32_0 : i32, i32
  }
  func.func @transform_7(%arg0: i32) -> (i32, i32) {
    %c0_i32 = arith.constant 0 : i32
    %c0_i32_0 = arith.constant 0 : i32
    %c0_i32_1 = arith.constant 0 : i32
    return %c0_i32, %c0_i32_0 : i32, i32
  }
  func.func @transform_8(%arg0: i32) -> (i32, i32) {
    %c0_i32 = arith.constant 0 : i32
    %c0_i32_0 = arith.constant 0 : i32
    %c0_i32_1 = arith.constant 0 : i32
    return %c0_i32, %c0_i32_0 : i32, i32
  }
  func.func @transform_9(%arg0: i32) -> (i32, i32) {
    %c0_i32 = arith.constant 0 : i32
    %c0_i32_0 = arith.constant 0 : i32
    %c0_i32_1 = arith.constant 0 : i32
    return %c0_i32, %c0_i32_0 : i32, i32
  }
  func.func @transform_10(%arg0: i32) -> (i32, i32, i32) {
    %c0_i32 = arith.constant 0 : i32
    %c0_i32_0 = arith.constant 0 : i32
    %c0_i32_1 = arith.constant 0 : i32
    %c0_i32_2 = arith.constant 0 : i32
    return %c0_i32, %c0_i32_0, %c0_i32_1 : i32, i32, i32
  }
  func.func @transform_11(%arg0: i32) -> (i32, i32) {
    %c0_i32 = arith.constant 0 : i32
    %c0_i32_0 = arith.constant 0 : i32
    %c0_i32_1 = arith.constant 0 : i32
    return %c0_i32, %c0_i32_0 : i32, i32
  }
  func.func @transform_12(%arg0: i32) -> (i32, i32) {
    %c0_i32 = arith.constant 0 : i32
    %c0_i32_0 = arith.constant 0 : i32
    %c0_i32_1 = arith.constant 0 : i32
    return %c0_i32, %c0_i32_0 : i32, i32
  }
  func.func @transform_13(%arg0: i32) -> (i32, i32) {
    %c0_i32 = arith.constant 0 : i32
    %c0_i32_0 = arith.constant 0 : i32
    %c0_i32_1 = arith.constant 0 : i32
    return %c0_i32, %c0_i32_0 : i32, i32
  }
  func.func @transform_14(%arg0: i32) -> (i32, i32) {
    %c0_i32 = arith.constant 0 : i32
    %c0_i32_0 = arith.constant 0 : i32
    %c0_i32_1 = arith.constant 0 : i32
    return %c0_i32, %c0_i32_0 : i32, i32
  }
  func.func @transform_15(%arg0: i32) -> (i32, i32) {
    %c0_i32 = arith.constant 0 : i32
    %c0_i32_0 = arith.constant 0 : i32
    %c0_i32_1 = arith.constant 0 : i32
    return %c0_i32, %c0_i32_0 : i32, i32
  }
  func.func @transform_16(%arg0: i32) -> (i32, i32) {
    %c0_i32 = arith.constant 0 : i32
    %c0_i32_0 = arith.constant 0 : i32
    %c0_i32_1 = arith.constant 0 : i32
    return %c0_i32, %c0_i32_0 : i32, i32
  }
  func.func @transform_17(%arg0: i32) -> (i32, i32, i32) {
    %c0_i32 = arith.constant 0 : i32
    %c0_i32_0 = arith.constant 0 : i32
    %c0_i32_1 = arith.constant 0 : i32
    return %arg0, %c0_i32, %c0_i32_0 : i32, i32, i32
  }
}

</mosaic_0001>

<bundles_post_ra>
// kernel: tile.13
= control target key start
LH: loop header
LB: loop body
LE: loop exit
PB: predicated region body
PF: predicated region fallthrough
CT: control target
= control target key end

     0   :  { %s28_s0 = inlined_call_operand.vmem [shape: f32[8], index: 0, kind: input, shape index: {}]   ;;  %s29_s1 = inlined_call_operand.vmem [shape: f32[16,8], index: 1, kind: output, shape index: {}]  }
   0x1   :  { %v4_v0 = vld [vmem:[%s28_s0] ss:$0 sm:$0xff] }
   0x2   :  { %5 = vst [vmem:[%s29_s1] sm:$0xff] %v4_v0  ;;  %8 = vst [vmem:[%s29_s1 + $0x8] sm:$0xff] %v4_v0 }

// kernel: tile.14
= control target key start
LH: loop header
LB: loop body
LE: loop exit
PB: predicated region body
PF: predicated region fallthrough
CT: control target
= control target key end

     0   :  { %s131_s10 = smov 120   ;;  %s132_s11 = smov 104   ;;  %vm3_vm0 = vcmask 64512   ;;  %vm9_vm1 = vcmask 1048512   ;;  %vm15_vm2 = vcmask 982912   ;;  %vm21_vm3 = vcmask 917312   ;;  %s207_s0 = inlined_call_operand.vmem [shape: f32[16,8], index: 0, kind: input, shape index: {}]   ;;  %s208_s1 = inlined_call_operand.vmem [shape: f32[1,128], index: 1, kind: output, shape index: {}]  }
   0x1   :  { %v101_v0 = vld [vmem:[%s207_s0 + $0xf] sm:$0x1]   ;;  %v103_v1 = vld [vmem:[%s207_s0 + $0xd] sm:$0x1]   ;;  %v102_v2 = vld [vmem:[%s207_s0 + $0xe] sm:$0x1]  }
   0x2   :  { %7 = vrot.lane.b32.xlu0 %v101_v0, %s131_s10  ;;  %19 = vrot.lane.b32.xlu1 %v103_v1, %s132_s11  ;;  %v104_v3 = vld [vmem:[%s207_s0 + $0xc] sm:$0x1]   ;;  %s133_s16 = smov 112   ;;  %s134_s17 = smov 96   ;;  %v105_v4 = vld [vmem:[%s207_s0 + $0xb] sm:$0x1]  }
   0x3   :  { %v106_v5 = vld [vmem:[%s207_s0 + $0xa] sm:$0x1]   ;;  %v2_v6 = vld [vmem:[%s207_s0] sm:$0x1]   ;;  %s135_s24 = smov 88   ;;  %s136_s25 = smov 80  }
   0x4   :  { %4 = vst.msk [vmem:[#allocation0] sm:$0x1] %vm3_vm0, %v2_v6   ;;  %v107_v7 = vld [vmem:[%s207_s0 + $0x9] sm:$0x1]   ;;  %v108_v8 = vld [vmem:[%s207_s0 + $0x8] sm:$0x1]  }
   0x5   :  { %s137_s30 = smov 72   ;;  %s138_s2 = smov 64   ;;  %v109_v9 = vld [vmem:[%s207_s0 + $0x7] sm:$0x1]   ;;  %v110_v10 = vld [vmem:[%s207_s0 + $0x6] sm:$0x1]  }
   0x6   :  { %13 = vrot.lane.b32.xlu0 %v102_v2, %s133_s16  ;;  %25 = vrot.lane.b32.xlu1 %v104_v3, %s134_s17  ;;  %s139_s7 = smov 56   ;;  %s140_s8 = smov 48   ;;  %v111_v11 = vld [vmem:[%s207_s0 + $0x5] sm:$0x1]   ;;  %v112_v12 = vld [vmem:[%s207_s0 + $0x4] sm:$0x1]  }
   0x7   :  { %s141_s13 = smov 40   ;;  %s142_s14 = smov 32   ;;  %v113_v13 = vld [vmem:[%s207_s0 + $0x3] sm:$0x1]   ;;  %v114_v14 = vld [vmem:[%s207_s0 + $0x2] sm:$0x1]  }
   0x8   :  { %s143_s19 = smov 24   ;;  %s144_s20 = smov 16   ;;  %v115_v15 = vld [vmem:[%s207_s0 + $0x1] sm:$0x1]   ;;  %vm27_vm4 = vcmask 851712   ;;  %vm33_vm5 = vcmask 786112  }
   0x9   :  { %s145_s0 = smov 8   ;;  %vm39_vm6 = vcmask 720512   ;;  %vm45_vm7 = vcmask 654912   ;;  %vm51_vm8 = vcmask 589312   ;;  %vm57_vm9 = vcmask 523712  }
   0xa   :  { %31 = vrot.lane.b32.xlu0 %v105_v4, %s135_s24  ;;  %37 = vrot.lane.b32.xlu1 %v106_v5, %s136_s25  ;;  %vm63_vm10 = vcmask 458112   ;;  %vm69_vm11 = vcmask 392512   ;;  %vm75_vm12 = vcmask 326912   ;;  %vm81_vm13 = vcmask 261312  }
   0xb   :  { %vm87_vm14 = vcmask 195712   ;;  %vm93_vm15 = vcmask 130112  }
   0xe   :  { %43 = vrot.lane.b32.xlu0 %v107_v7, %s137_s30  ;;  %49 = vrot.lane.b32.xlu1 %v108_v8, %s138_s2 }
  0x12   :  { %55 = vrot.lane.b32.xlu0 %v109_v9, %s139_s7  ;;  %61 = vrot.lane.b32.xlu1 %v110_v10, %s140_s8 }
  0x16   :  { %67 = vrot.lane.b32.xlu0 %v111_v11, %s141_s13  ;;  %73 = vrot.lane.b32.xlu1 %v112_v12, %s142_s14 }
  0x1a   :  { %79 = vrot.lane.b32.xlu0 %v113_v13, %s143_s19  ;;  %85 = vrot.lane.b32.xlu1 %v114_v14, %s144_s20 }
  0x1e   :  { %91 = vrot.lane.b32.xlu0 %v115_v15, %s145_s0 }
  0x74   :  { %v8_v16 = vpop.permute.xlu0 %7   ;;  %v20_v17 = vpop.permute.xlu1 %19  }
  0x75   :  { %10 = vst.msk [vmem:[#allocation0] sm:$0x1] %vm9_vm1, %v8_v16  }
  0x78   :  { %v14_v18 = vpop.permute.xlu0 %13   ;;  %v26_v19 = vpop.permute.xlu1 %25  }
  0x79   :  { %16 = vst.msk [vmem:[#allocation0] sm:$0x1] %vm15_vm2, %v14_v18  }
  0x7a   :  { %22 = vst.msk [vmem:[#allocation0] sm:$0x1] %vm21_vm3, %v20_v17  }
  0x7b   :  { %28 = vst.msk [vmem:[#allocation0] sm:$0x1] %vm27_vm4, %v26_v19  }
  0x7c   :  { %v32_v20 = vpop.permute.xlu0 %31   ;;  %v38_v21 = vpop.permute.xlu1 %37  }
  0x7d   :  { %34 = vst.msk [vmem:[#allocation0] sm:$0x1] %vm33_vm5, %v32_v20  }
  0x7e   :  { %40 = vst.msk [vmem:[#allocation0] sm:$0x1] %vm39_vm6, %v38_v21  }
  0x80   :  { %v44_v22 = vpop.permute.xlu0 %43   ;;  %v50_v23 = vpop.permute.xlu1 %49  }
  0x81   :  { %46 = vst.msk [vmem:[#allocation0] sm:$0x1] %vm45_vm7, %v44_v22  }
  0x82   :  { %52 = vst.msk [vmem:[#allocation0] sm:$0x1] %vm51_vm8, %v50_v23  }
  0x84   :  { %v56_v24 = vpop.permute.xlu0 %55   ;;  %v62_v25 = vpop.permute.xlu1 %61  }
  0x85   :  { %58 = vst.msk [vmem:[#allocation0] sm:$0x1] %vm57_vm9, %v56_v24  }
  0x86   :  { %64 = vst.msk [vmem:[#allocation0] sm:$0x1] %vm63_vm10, %v62_v25  }
  0x88   :  { %v68_v26 = vpop.permute.xlu0 %67   ;;  %v74_v27 = vpop.permute.xlu1 %73  }
  0x89   :  { %70 = vst.msk [vmem:[#allocation0] sm:$0x1] %vm69_vm11, %v68_v26  }
  0x8a   :  { %76 = vst.msk [vmem:[#allocation0] sm:$0x1] %vm75_vm12, %v74_v27  }
  0x8c   :  { %v80_v28 = vpop.permute.xlu0 %79   ;;  %v86_v29 = vpop.permute.xlu1 %85  }
  0x8d   :  { %82 = vst.msk [vmem:[#allocation0] sm:$0x1] %vm81_vm13, %v80_v28  }
  0x8e   :  { %88 = vst.msk [vmem:[#allocation0] sm:$0x1] %vm87_vm14, %v86_v29  }
  0x90   :  { %v92_v30 = vpop.permute.xlu0 %91  }
  0x91   :  { %94 = vst.msk [vmem:[#allocation0] sm:$0x1] %vm93_vm15, %v92_v30  }
  0x98   :  { %v98_v31 = vld [vmem:[#allocation0] sm:$0x1] }
  0x99   :  { %100 = vst [vmem:[%s208_s1] sm:$0x1] %v98_v31 }

// kernel: cnn_critic_v3_forward.1
= control target key start
LH: loop header
LB: loop body
LE: loop exit
PB: predicated region body
PF: predicated region fallthrough
CT: control target
= control target key end

     0   :  { %s5391_s0 = inlined_call_operand.vmem [shape: bf16[2,256,576], index: 0, kind: input, shape index: {}]   ;;  %s5392_s1 = inlined_call_operand.vmem [shape: bf16[2,1,6], index: 1, kind: input, shape index: {}]   ;;  %s5393_s2 = inlined_call_operand.vmem [shape: bf16[576,128], index: 2, kind: input, shape index: {}]   ;;  %s5394_s3 = inlined_call_operand.vmem [shape: f32[1,128], index: 3, kind: input, shape index: {}]   ;;  %s5395_s4 = inlined_call_operand.vmem [shape: f32[1,128], index: 4, kind: input, shape index: {}]   ;;  %s5396_s5 = inlined_call_operand.vmem [shape: bf16[128,16], index: 5, kind: input, shape index: {}]   ;;  %s5397_s6 = inlined_call_operand.vmem [shape: f32[1,16], index: 6, kind: input, shape index: {}]   ;;  %s5398_s7 = inlined_call_operand.vmem [shape: f32[1,16], index: 7, kind: input, shape index: {}]   ;;  %s5399_s8 = inlined_call_operand.vmem [shape: bf16[6,96], index: 8, kind: input, shape index: {}]   ;;  %s5400_s9 = inlined_call_operand.vmem [shape: f32[1,96], index: 9, kind: input, shape index: {}]   ;;  %s5401_s10 = inlined_call_operand.vmem [shape: bf16[16,16,128], index: 10, kind: input, shape index: {}]   ;;  %s5402_s11 = inlined_call_operand.vmem [shape: bf16[96,128], index: 11, kind: input, shape index: {}]   ;;  %s5403_s12 = inlined_call_operand.vmem [shape: f32[1,128], index: 12, kind: input, shape index: {}]   ;;  %s5404_s13 = inlined_call_operand.vmem [shape: bf16[128,64], index: 13, kind: input, shape index: {}]   ;;  %s5405_s14 = inlined_call_operand.vmem [shape: f32[1,64], index: 14, kind: input, shape index: {}]   ;;  %s5406_s15 = inlined_call_operand.vmem [shape: bf16[64,2], index: 15, kind: input, shape index: {}]   ;;  %s5407_s16 = inlined_call_operand.vmem [shape: f32[1,2], index: 16, kind: input, shape index: {}]   ;;  %s5408_s17 = inlined_call_operand.hbm [shape: f32[2,1,2], index: 17, kind: output, shape index: {}]  }
   0x1   :  { %5416 = sst [smem:[#allocation11_spill]] %s5391_s0 }
   0x2   :  { %5417 = sst [smem:[#allocation12_spill]] %s5392_s1 }
   0x3   :  { %5418 = sst [smem:[#allocation13_spill]] %s5408_s17 }
   0x4   :  { %22 = vsyncpa [#allocation3], 0 }
   0x5   :  { %24 = vsyncpa [#allocation3 + $0x1], 0  ;;  %s4576_s24 = smov 0   ;;  %s4578_s25 = smov 0  }
   0x6   :  { %s4580_s26 = smov 0   ;;  %s4582_s27 = smov 0  }
   0x7 LB: > { %5419 = sst [smem:[#allocation5_spill]] %s4469_s24  ;;  %s4597_s28 = sadd.s32 4294967295, %s4481_s27   ;;  %s4481_s27 = sphi %s4582_s27, %s5433_s27   ;;  %s4477_s26 = sphi %s4580_s26, %s5435_s26   ;;  %s4473_s25 = sphi %s4578_s25, %s5437_s25   ;;  %s4469_s24 = sphi %s4576_s24, %s5436_s24  }
   0x8   : > { %5420 = sst [smem:[#allocation6_spill]] %s4477_s26  ;;  %s3427_s29 = sadd.s32 4294967294, %s4481_s27  }
   0x9   : > { %5421 = sst [smem:[#allocation7_spill]] %s4481_s27  ;;  %s4601_s0 = sadd.s32 1, %s4481_s27  }
   0xa   : > { %5422 = sst [smem:[#allocation8_spill]] %s4601_s0  ;;  %s404_s30 = sadd.s32 1, %s4477_s26 }
   0xb   : > { %s401_s18 = ssub.s32 %s4481_s27, %s4601_s0  ;;  %p414_p0 = scmp.ne.s32.totalorder %s4477_s26, %s4473_s25 }
   0xc   : > { %p402_p1 = scmp.eq.s32.totalorder %s401_s18, 0  ;;  %p415_p2 = scmp.eq.s32.totalorder %s4597_s28, 1 }
   0xd   : > { %p420_p3 = scmp.ne.s32.totalorder %s4473_s25, %s4469_s24  ;;  %p421_p4 = scmp.eq.s32.totalorder %s3427_s29, 1 }
   0xe   : > { %s4612_s19 = scalar_select %p402_p1, %s4477_s26, %s404_s30  }
   0xf   : > { %p4614_p5 = por %p415_p2, %p414_p0  ;;  %p4618_p6 = por %p421_p4, %p420_p3 }
  0x10   : > { %5423 = sst [smem:[#allocation9_spill]] %s4612_s19  ;;  %p3430_p7 = scmp.ge.s32.totalorder %s4481_s27, 1 }
  0x11   : > { %s5425_s20 = scalar_select %p4618_p6, 1, 0 }
  0x12   : > { %p498_p8 = scmp.lt.s32.totalorder %s4481_s27, 3 }
  0x13   : > { %5426 = sst [smem:[#allocation10_spill]] %s5425_s20 }
  0x14   : > { %p499_p9 = pnand %p3430_p7, %p498_p8 }
  0x15   : > { %v4229_v0 = vld [vmem:[%s5393_s2 + $0x40] sm:$0xff] (!%p499_p9)   ;;  %v4233_v4 = vld [vmem:[%s5393_s2 + $0x48] sm:$0xff] (!%p499_p9)   ;;  %v4237_v8 = vld [vmem:[%s5393_s2 + $0x50] sm:$0xff] (!%p499_p9)   ;;  %p552_p10 = scmp.lt.s32.totalorder (!%p499_p9), %s4597_s28, 1  ;;  %s5427_s17 = sld [smem:[#allocation11_spill]] (!%p499_p9)  ;;  %vm1345_vm0 = vcmask (!%p499_p9), 523264  }
  0x16   : > { %502 = sbr.rel (%p499_p9) target bundleno = 1624 (0x658), region = 88  ;;  %v4230_v1 = vld [vmem:[%s5393_s2 + $0xc0] sm:$0xff] (!%p499_p9)   ;;  %3662 = vmatprep.subr.bf16.mxu0 (!%p499_p9), %v4229_v0  ;;  %v4234_v5 = vld [vmem:[%s5393_s2 + $0xc8] sm:$0xff] (!%p499_p9)   ;;  %v4238_v9 = vld [vmem:[%s5393_s2 + $0xd0] sm:$0xff] (!%p499_p9)   ;;  %vm4484_vm1 = vmmov (!%p499_p9), 0   ;;  %vm2173_vm2 = vcmask (!%p499_p9), 130048  }
  0x17   : > { %v4231_v2 = vld [vmem:[%s5393_s2] sm:$0xff] (!%p499_p9)   ;;  %3774 = vmatprep.subr.bf16.mxu1 (!%p499_p9), %v4230_v1  ;;  %v4235_v6 = vld [vmem:[%s5393_s2 + $0x8] sm:$0xff] (!%p499_p9)   ;;  %v4239_v10 = vld [vmem:[%s5393_s2 + $0x10] sm:$0xff] (!%p499_p9)   ;;  %vm3022_vm3 = vcmask (!%p499_p9), 1042432   ;;  %s5428_s0 = sld [smem:[#allocation12_spill]] (!%p499_p9)  ;;  %vm3018_vm4 = vcmask (!%p499_p9), 48128  }
  0x18   : > { %v4232_v3 = vld [vmem:[%s5393_s2 + $0x80] sm:$0xff] (!%p499_p9)   ;;  %3663 = vmatpush3.bf16.msra.mxu0 (!%p499_p9), %v4231_v2  ;;  %v4236_v7 = vld [vmem:[%s5393_s2 + $0x88] sm:$0xff] (!%p499_p9)   ;;  %v4240_v11 = vld [vmem:[%s5393_s2 + $0x90] sm:$0xff] (!%p499_p9)   ;;  %vm3116_vm5 = vcmask (!%p499_p9), 785408   ;;  %s550_s27 = sand.u32 (!%p499_p9), 1, %s4473_s25   ;;  %s3659_s20 = sshll.u32 (!%p499_p9), %s4597_s28, 4 }
  0x19   : > { %3775 = vmatpush3.bf16.msra.mxu1 (!%p499_p9), %v4232_v3  ;;  %3664 = vmatprep.subr.bf16.mxu0 (!%p499_p9), %v4233_v4  ;;  %v4241_v12 = vld [vmem:[%s5393_s2 + $0x58] sm:$0xff] (!%p499_p9)   ;;  %v4245_v16 = vld [vmem:[%s5393_s2 + $0x60] sm:$0xff] (!%p499_p9)   ;;  %v4249_v20 = vld [vmem:[%s5393_s2 + $0x68] sm:$0xff] (!%p499_p9)   ;;  %s551_s21 = scalar_lea.vmem (!%p499_p9), [#allocation2], %s550_s27  ;;  %vm3348_vm6 = vcmask (!%p499_p9), 8192   ;;  %s5429_s18 = sld [smem:[#allocation13_spill]] (!%p499_p9) }
  0x1a   : > { %3776 = vmatprep.subr.bf16.mxu1 (!%p499_p9), %v4234_v5  ;;  %v4242_v13 = vld [vmem:[%s5393_s2 + $0xd8] sm:$0xff] (!%p499_p9)   ;;  %v4246_v17 = vld [vmem:[%s5393_s2 + $0xe0] sm:$0xff] (!%p499_p9)   ;;  %v4250_v21 = vld [vmem:[%s5393_s2 + $0xe8] sm:$0xff] (!%p499_p9)  }
  0x1b   : > { %v4243_v14 = vld [vmem:[%s5393_s2 + $0x18] sm:$0xff] (!%p499_p9)   ;;  %v4247_v18 = vld [vmem:[%s5393_s2 + $0x20] sm:$0xff] (!%p499_p9)   ;;  %v4251_v22 = vld [vmem:[%s5393_s2 + $0x28] sm:$0xff] (!%p499_p9)  }
  0x1c   : > { %3665 = vmatpush3.bf16.msra.mxu0 (!%p499_p9), %v4235_v6  ;;  %v4244_v15 = vld [vmem:[%s5393_s2 + $0x98] sm:$0xff] (!%p499_p9)   ;;  %v4248_v19 = vld [vmem:[%s5393_s2 + $0xa0] sm:$0xff] (!%p499_p9)   ;;  %v4252_v23 = vld [vmem:[%s5393_s2 + $0xa8] sm:$0xff] (!%p499_p9)  }
  0x1d   : > { %3777 = vmatpush3.bf16.msra.mxu1 %v4236_v7  ;;  %3666 = vmatprep.subr.bf16.mxu0 %v4237_v8  ;;  %s4692_s30 = scalar_select %p552_p10, %s4597_s28, 1  ;;  %v4253_v24 = vld [vmem:[%s5393_s2 + $0x70] sm:$0xff]   ;;  %v4257_v28 = vld [vmem:[%s5393_s2 + $0x78] sm:$0xff]   ;;  %v4267_v36 = vld [vmem:[%s5393_s2 + $0x100] sm:$0xff]  }
  0x1e   : > { %3778 = vmatprep.subr.bf16.mxu1 %v4238_v9  ;;  %v4254_v25 = vld [vmem:[%s5393_s2 + $0xf0] sm:$0xff]   ;;  %v4258_v29 = vld [vmem:[%s5393_s2 + $0xf8] sm:$0xff]   ;;  %v4292_v43 = vld [vmem:[%s5393_s2 + $0x108] sm:$0xff]   ;;  %s3351_s28 = scalar_lea.sflag [#allocation3], %s550_s27 }
  0x1f   : > { %s4187_s29 = smul.u32 640, %s4692_s30  ;;  %v4255_v26 = vld [vmem:[%s5393_s2 + $0x30] sm:$0xff]   ;;  %v4259_v30 = vld [vmem:[%s5393_s2 + $0x38] sm:$0xff]   ;;  %s5349_s26 = scalar_lea.hbm %s5429_s18, %s3659_s20 }
  0x20   : > { %3667 = vmatpush3.bf16.msra.mxu0 %v4239_v10  ;;  %v4256_v27 = vld [vmem:[%s5393_s2 + $0xb0] sm:$0xff]   ;;  %v4260_v31 = vld [vmem:[%s5393_s2 + $0xb8] sm:$0xff]  }
  0x21   : > { %3779 = vmatpush3.bf16.msra.mxu1 %v4240_v11  ;;  %3668 = vmatprep.subr.bf16.mxu0 %v4241_v12  ;;  %s4722_s24 = scalar_lea.vmem %s5427_s17, %s4187_s29  ;;  %v4317_v52 = vld [vmem:[%s5393_s2 + $0x110] sm:$0xff]   ;;  %v4342_v57 = vld [vmem:[%s5393_s2 + $0x118] sm:$0xff]   ;;  %s559_s17 = scalar_lea.vmem %s5428_s0, %s4692_s30 }
  0x22   : > { %3780 = vmatprep.subr.bf16.mxu1 %v4242_v13  ;;  %v4261_v32 = vld [vmem:[%s4722_s24] ss:$20 sps:$4 sm:$0xff]   ;;  %v4263_v33 = vld [vmem:[%s4722_s24 + $0x4] ss:$20 sps:$4 sm:$0xff]   ;;  %v4264_v34 = vld [vmem:[%s4722_s24 + $0x8] ss:$20 sps:$4 sm:$0xff]  }
  0x23   : > { %v4266_v35 = vld [vmem:[%s4722_s24 + $0xc] ss:$20 sps:$4 sm:$0xff]   ;;  %1426 = vmatprep.mubr.bf16.mxu0 %v4263_v33  ;;  %v4270_v38 = vld [vmem:[%s4722_s24 + $0x34] ss:$20 sps:$4 sm:$0xff]   ;;  %v4273_v40 = vld [vmem:[%s4722_s24 + $0x30] ss:$20 sps:$4 sm:$0xff]  }
  0x24   : > { %3669 = vmatpush3.bf16.msra.mxu0 %v4243_v14  ;;  %1587 = vmatprep.mubr.bf16.mxu1 %v4266_v35  ;;  %v4268_v37 = vld [vmem:[%s4722_s24 + $0x2c] ss:$20 sps:$4 sm:$0xff]   ;;  %v4272_v39 = vld [vmem:[%s4722_s24 + $0x28] ss:$20 sps:$4 sm:$0xff]   ;;  %v4278_v44 = vld [vmem:[%s4722_s24 + $0x50] ss:$20 sps:$4 sm:$0xff]  }
  0x25   : > { %3781 = vmatpush3.bf16.msra.mxu1 %v4244_v15  ;;  %3670 = vmatprep.subr.bf16.mxu0 %v4245_v16  ;;  %v4274_v41 = vld [vmem:[%s4722_s24 + $0x54] ss:$20 sps:$4 sm:$0xff]   ;;  %v4276_v42 = vld [vmem:[%s4722_s24 + $0x5c] ss:$20 sps:$4 sm:$0xff]   ;;  %v4279_v45 = vld [vmem:[%s4722_s24 + $0x58] ss:$20 sps:$4 sm:$0xff]  }
  0x26   : > { %3782 = vmatprep.subr.bf16.mxu1 %v4246_v17  ;;  %v4280_v46 = vld [vmem:[%s4722_s24 + $0x7c] ss:$20 sps:$4 sm:$0xff]   ;;  %v4282_v47 = vld [vmem:[%s4722_s24 + $0x84] ss:$20 sps:$4 sm:$0xff]   ;;  %v4285_v49 = vld [vmem:[%s4722_s24 + $0x80] ss:$20 sps:$4 sm:$0xff]  }
  0x27   : > { %v4284_v48 = vld [vmem:[%s4722_s24 + $0x78] ss:$20 sps:$4 sm:$0xff]   ;;  %v4290_v53 = vld [vmem:[%s4722_s24 + $0xa0] ss:$20 sps:$4 sm:$0xff]   ;;  %v4291_v54 = vld [vmem:[%s4722_s24 + $0xa8] ss:$20 sps:$4 sm:$0xff]  }
  0x28   : > { %3671 = vmatpush3.bf16.msra.mxu0 %v4247_v18  ;;  %v4286_v50 = vld [vmem:[%s4722_s24 + $0xa4] ss:$20 sps:$4 sm:$0xff]   ;;  %v4288_v51 = vld [vmem:[%s4722_s24 + $0xac] ss:$20 sps:$4 sm:$0xff]   ;;  %v4295_v56 = vld [vmem:[%s4722_s24 + $0xd4] ss:$20 sps:$4 sm:$0xff]  }
  0x29   : > { %3783 = vmatpush3.bf16.msra.mxu1 %v4248_v19  ;;  %3672 = vmatprep.subr.bf16.mxu0 %v4249_v20  ;;  %v4293_v55 = vld [vmem:[%s4722_s24 + $0xcc] ss:$20 sps:$4 sm:$0xff]   ;;  %v4297_v58 = vld [vmem:[%s4722_s24 + $0xc8] ss:$20 sps:$4 sm:$0xff]   ;;  %v4298_v59 = vld [vmem:[%s4722_s24 + $0xd0] ss:$20 sps:$4 sm:$0xff]  }
  0x2a   : > { %3784 = vmatprep.subr.bf16.mxu1 %v4250_v21  ;;  %v4299_v60 = vld [vmem:[%s4722_s24 + $0xf4] ss:$20 sps:$4 sm:$0xff]   ;;  %v4301_v61 = vld [vmem:[%s4722_s24 + $0xfc] ss:$20 sps:$4 sm:$0xff]   ;;  %v4304_v63 = vld [vmem:[%s4722_s24 + $0xf8] ss:$20 sps:$4 sm:$0xff]  }
  0x2b   : > { %v4303_v62 = vld [vmem:[%s4722_s24 + $0xf0] ss:$20 sps:$4 sm:$0xff]   ;;  %v4309_v2 = vld [vmem:[%s4722_s24 + $0x118] ss:$20 sps:$4 sm:$0xff]   ;;  %v4310_v3 = vld [vmem:[%s4722_s24 + $0x120] ss:$20 sps:$4 sm:$0xff]  }
  0x2c   : > { %3673 = vmatpush3.bf16.msra.mxu0 %v4251_v22  ;;  %v4305_v0 = vld [vmem:[%s4722_s24 + $0x11c] ss:$20 sps:$4 sm:$0xff]   ;;  %v4307_v1 = vld [vmem:[%s4722_s24 + $0x124] ss:$20 sps:$4 sm:$0xff]   ;;  %v4313_v5 = vld [vmem:[%s4722_s24 + $0x14c] ss:$20 sps:$4 sm:$0xff]  }
  0x2d   : > { %3785 = vmatpush3.bf16.msra.mxu1 %v4252_v23  ;;  %3674 = vmatprep.subr.bf16.mxu0 %v4253_v24  ;;  %v4311_v4 = vld [vmem:[%s4722_s24 + $0x144] ss:$20 sps:$4 sm:$0xff]   ;;  %v4315_v6 = vld [vmem:[%s4722_s24 + $0x140] ss:$20 sps:$4 sm:$0xff]   ;;  %v4316_v7 = vld [vmem:[%s4722_s24 + $0x148] ss:$20 sps:$4 sm:$0xff]  }
  0x2e   : > { %3786 = vmatprep.subr.bf16.mxu1 %v4254_v25  ;;  %v4318_v8 = vld [vmem:[%s4722_s24 + $0x16c] ss:$20 sps:$4 sm:$0xff]   ;;  %v4320_v9 = vld [vmem:[%s4722_s24 + $0x174] ss:$20 sps:$4 sm:$0xff]   ;;  %v4323_v11 = vld [vmem:[%s4722_s24 + $0x170] ss:$20 sps:$4 sm:$0xff]  }
  0x2f   : > { %v4322_v10 = vld [vmem:[%s4722_s24 + $0x168] ss:$20 sps:$4 sm:$0xff]   ;;  %v4328_v14 = vld [vmem:[%s4722_s24 + $0x190] ss:$20 sps:$4 sm:$0xff]   ;;  %v4329_v15 = vld [vmem:[%s4722_s24 + $0x198] ss:$20 sps:$4 sm:$0xff]  }
  0x30   : > { %3675 = vmatpush3.bf16.msra.mxu0 %v4255_v26  ;;  %v4324_v12 = vld [vmem:[%s4722_s24 + $0x194] ss:$20 sps:$4 sm:$0xff]   ;;  %v4326_v13 = vld [vmem:[%s4722_s24 + $0x19c] ss:$20 sps:$4 sm:$0xff]   ;;  %v4332_v17 = vld [vmem:[%s4722_s24 + $0x1c4] ss:$20 sps:$4 sm:$0xff]  }
  0x31   : > { %3787 = vmatpush3.bf16.msra.mxu1 %v4256_v27  ;;  %3676 = vmatprep.subr.bf16.mxu0 %v4257_v28  ;;  %v4330_v16 = vld [vmem:[%s4722_s24 + $0x1bc] ss:$20 sps:$4 sm:$0xff]   ;;  %v4334_v18 = vld [vmem:[%s4722_s24 + $0x1b8] ss:$20 sps:$4 sm:$0xff]   ;;  %v4335_v19 = vld [vmem:[%s4722_s24 + $0x1c0] ss:$20 sps:$4 sm:$0xff]  }
  0x32   : > { %3788 = vmatprep.subr.bf16.mxu1 %v4258_v29  ;;  %v4336_v20 = vld [vmem:[%s4722_s24 + $0x1e4] ss:$20 sps:$4 sm:$0xff]   ;;  %v4338_v21 = vld [vmem:[%s4722_s24 + $0x1ec] ss:$20 sps:$4 sm:$0xff]   ;;  %v4341_v23 = vld [vmem:[%s4722_s24 + $0x1e8] ss:$20 sps:$4 sm:$0xff]  }
  0x33   : > { %v4340_v22 = vld [vmem:[%s4722_s24 + $0x1e0] ss:$20 sps:$4 sm:$0xff]   ;;  %v4347_v26 = vld [vmem:[%s4722_s24 + $0x208] ss:$20 sps:$4 sm:$0xff]   ;;  %v4348_v27 = vld [vmem:[%s4722_s24 + $0x210] ss:$20 sps:$4 sm:$0xff]  }
  0x34   : > { %3677 = vmatpush3.bf16.msra.mxu0 %v4259_v30  ;;  %v4343_v24 = vld [vmem:[%s4722_s24 + $0x20c] ss:$20 sps:$4 sm:$0xff]   ;;  %v4345_v25 = vld [vmem:[%s4722_s24 + $0x214] ss:$20 sps:$4 sm:$0xff]   ;;  %v4351_v29 = vld [vmem:[%s4722_s24 + $0x23c] ss:$20 sps:$4 sm:$0xff]  }
  0x35   : > { %3789 = vmatpush3.bf16.msra.mxu1 %v4260_v31  ;;  %3973 = vmatprep.subr.bf16.mxu0 %v4267_v36  ;;  %v4349_v28 = vld [vmem:[%s4722_s24 + $0x234] ss:$20 sps:$4 sm:$0xff]   ;;  %v4353_v30 = vld [vmem:[%s4722_s24 + $0x230] ss:$20 sps:$4 sm:$0xff]   ;;  %v4354_v31 = vld [vmem:[%s4722_s24 + $0x238] ss:$20 sps:$4 sm:$0xff]  }
  0x36   : > { %v4357_v33 = vld [vmem:[%s4722_s24 + $0x264] ss:$20 sps:$4 sm:$0xff]   ;;  %v4360_v35 = vld [vmem:[%s4722_s24 + $0x260] ss:$20 sps:$4 sm:$0xff]   ;;  %s4485_s0 = smov [#allocation2]  }
  0x37   : > { %1427 = vmatmul.mubr.bf16.vlgmr.msra.gmra.mrb[0].mxu0 %v4261_v32  ;;  %v4355_v32 = vld [vmem:[%s4722_s24 + $0x25c] ss:$20 sps:$4 sm:$0xff]  }
  0x38   : > { %1588 = vmatmul.mubr.bf16.vlgmr.msra.gmra.mrb[0].mxu1 %v4264_v34  ;;  %3974 = vmatpush3.bf16.msra.mxu0 %v4267_v36  ;;  %v4359_v34 = vld [vmem:[%s4722_s24 + $0x258] ss:$20 sps:$4 sm:$0xff]   ;;  %v4361_v36 = vld [vmem:[%s4722_s24 + $0x10] ss:$20 sps:$4 sm:$0xff]  }
  0x39   : > { %1434 = vmatprep.mubr.bf16.mxu0 %v4268_v37  ;;  %1595 = vmatprep.mubr.bf16.mxu1 %v4270_v38  ;;  %v4362_v37 = vld [vmem:[%s4722_s24 + $0x38] ss:$20 sps:$4 sm:$0xff]   ;;  %v4363_v38 = vld [vmem:[%s4722_s24 + $0x60] ss:$20 sps:$4 sm:$0xff]  }
  0x3a   : > { %3975 = vmatprep.subr.bf16.mxu0 %v4292_v43 }
  0x3c   : > { %3976 = vmatpush3.bf16.msra.mxu0 %v4292_v43  ;;  %v4368_v43 = vld [vmem:[%s4722_s24 + $0x128] ss:$20 sps:$4 sm:$0xff]  }
  0x3d   : > { %3977 = vmatprep.subr.bf16.mxu0 %v4317_v52 }
  0x3f   : > { %1435 = vmatmul.mubr.bf16.gmra.mrb[4].mxu0 %v4272_v39  ;;  %v4364_v39 = vld [vmem:[%s4722_s24 + $0x88] ss:$20 sps:$4 sm:$0xff]  }
  0x40   : > { %1596 = vmatmul.mubr.bf16.gmra.mrb[4].mxu1 %v4273_v40  ;;  %1442 = vmatprep.mubr.bf16.mxu0 %v4274_v41  ;;  %v4365_v40 = vld [vmem:[%s4722_s24 + $0xb0] ss:$20 sps:$4 sm:$0xff]   ;;  %v4366_v41 = vld [vmem:[%s4722_s24 + $0xd8] ss:$20 sps:$4 sm:$0xff]  }
  0x41   : > { %1603 = vmatprep.mubr.bf16.mxu1 %v4276_v42  ;;  %3978 = vmatpush3.bf16.msra.mxu0 %v4317_v52  ;;  %v4367_v42 = vld [vmem:[%s4722_s24 + $0x100] ss:$20 sps:$4 sm:$0xff]  }
  0x42   : > { %3979 = vmatprep.subr.bf16.mxu0 %v4342_v57  ;;  %v4375_v52 = vld [vmem:[%s4722_s24 + $0x240] ss:$20 sps:$4 sm:$0xff]  }
  0x45   : > { %3980 = vmatpush3.bf16.msra.mxu0 %v4342_v57 }
  0x47   : > { %1443 = vmatmul.mubr.bf16.gmra.mrb[8].mxu0 %v4278_v44  ;;  %v4369_v44 = vld [vmem:[%s4722_s24 + $0x150] ss:$20 sps:$4 sm:$0xff]  }
  0x48   : > { %1604 = vmatmul.mubr.bf16.gmra.mrb[8].mxu1 %v4279_v45  ;;  %1450 = vmatprep.mubr.bf16.mxu0 %v4280_v46  ;;  %v4377_v45 = vld [vmem:[%s5396_s5] sm:$0xff]   ;;  %v4370_v46 = vld [vmem:[%s4722_s24 + $0x178] ss:$20 sps:$4 sm:$0xff]  }
  0x49   : > { %1611 = vmatprep.mubr.bf16.mxu1 %v4282_v47  ;;  %4013 = vmatprep.subr.bf16.mxu1 %v4377_v45  ;;  %v4371_v47 = vld [vmem:[%s4722_s24 + $0x1a0] ss:$20 sps:$4 sm:$0xff]  }
  0x4a   : > { %4014 = vmatpush3.bf16.msra.mxu1 %v4377_v45 }
  0x4f   : > { %1451 = vmatmul.mubr.bf16.gmra.mrb[12].mxu0 %v4284_v48  ;;  %v4372_v48 = vld [vmem:[%s4722_s24 + $0x1c8] ss:$20 sps:$4 sm:$0xff]  }
  0x50   : > { %1612 = vmatmul.mubr.bf16.gmra.mrb[12].mxu1 %v4285_v49  ;;  %1458 = vmatprep.mubr.bf16.mxu0 %v4286_v50  ;;  %v4373_v49 = vld [vmem:[%s4722_s24 + $0x1f0] ss:$20 sps:$4 sm:$0xff]   ;;  %v4378_v50 = vld [vmem:[%s5396_s5 + $0x8] sm:$0xff]  }
  0x51   : > { %1619 = vmatprep.mubr.bf16.mxu1 %v4288_v51  ;;  %4015 = vmatprep.subr.bf16.mxu1 %v4378_v50  ;;  %v4374_v51 = vld [vmem:[%s4722_s24 + $0x218] ss:$20 sps:$4 sm:$0xff]  }
  0x52   : > { %4016 = vmatpush3.bf16.msra.mxu1 %v4378_v50 }
  0x57   : > { %1459 = vmatmul.mubr.bf16.gmra.mrb[16].mxu0 %v4290_v53  ;;  %v4376_v53 = vld [vmem:[%s4722_s24 + $0x268] ss:$20 sps:$4 sm:$0xff]   ;;  %s3363_s24 = sshll.u32 %s551_s21, 4  ;;  %s5351_s24 = int_to_ptr.vmem [resolvable:$true] %s3363_s24 }
  0x58   : > { %1620 = vmatmul.mubr.bf16.gmra.mrb[16].mxu1 %v4291_v54  ;;  %1466 = vmatprep.mubr.bf16.mxu0 %v4293_v55  ;;  %v4379_v54 = vld [vmem:[%s5396_s5 + $0x10] sm:$0xff]   ;;  %v4380_v55 = vld [vmem:[%s5396_s5 + $0x18] sm:$0xff]   ;;  %s4419_s19 = scalar_lea.vmem %s5351_s24, 16 }
  0x59   : > { %1627 = vmatprep.mubr.bf16.mxu1 %v4295_v56  ;;  %4017 = vmatprep.subr.bf16.mxu1 %v4379_v54  ;;  %p4420_p11 = scmp.ne.s32.totalorder %s5351_s24, %s4419_s19 }
  0x5a   : > { %4018 = vmatpush3.bf16.msra.mxu1 %v4379_v54 }
  0x5b   : > { %4019 = vmatprep.subr.bf16.mxu1 %v4380_v55  ;;  %p4421_p12 = pnand %p4420_p11, %p4614_p5 }
  0x5d   : > { %p4422_p13 = pneg %p4421_p12 }
  0x5e   : > { %4020 = vmatpush3.bf16.msra.mxu1 %v4380_v55 }
  0x5f   : > { %1467 = vmatmul.mubr.bf16.gmra.mrb[20].mxu0 %v4297_v58 }
  0x60   : > { %1628 = vmatmul.mubr.bf16.gmra.mrb[20].mxu1 %v4298_v59  ;;  %1474 = vmatprep.mubr.bf16.mxu0 %v4299_v60 }
  0x61   : > { %1635 = vmatprep.mubr.bf16.mxu1 %v4301_v61 }
  0x67   : > { %1475 = vmatmul.mubr.bf16.gmra.mrb[24].mxu0 %v4303_v62 }
  0x68   : > { %1636 = vmatmul.mubr.bf16.gmra.mrb[24].mxu1 %v4304_v63  ;;  %1482 = vmatprep.mubr.bf16.mxu0 %v4305_v0 }
  0x69   : > { %1643 = vmatprep.mubr.bf16.mxu1 %v4307_v1 }
  0x6f   : > { %1483 = vmatmul.mubr.bf16.gmra.mrb[28].mxu0 %v4309_v2 }
  0x70   : > { %1644 = vmatmul.mubr.bf16.gmra.mrb[28].mxu1 %v4310_v3  ;;  %1490 = vmatprep.mubr.bf16.mxu0 %v4311_v4 }
  0x71   : > { %1651 = vmatprep.mubr.bf16.mxu1 %v4313_v5 }
  0x77   : > { %1491 = vmatmul.mubr.bf16.gmra.mrb[32].mxu0 %v4315_v6 }
  0x78   : > { %1652 = vmatmul.mubr.bf16.gmra.mrb[32].mxu1 %v4316_v7  ;;  %1498 = vmatprep.mubr.bf16.mxu0 %v4318_v8  ;;  %v4381_v7 = vld [vmem:[%s5396_s5 + $0x20] sm:$0xff]  }
  0x79   : > { %1659 = vmatprep.mubr.bf16.mxu1 %v4320_v9  ;;  %4021 = vmatprep.subr.bf16.mxu1 %v4381_v7 }
  0x7a   : > { %4022 = vmatpush3.bf16.msra.mxu1 %v4381_v7 }
  0x7f   : > { %1499 = vmatmul.mubr.bf16.gmra.mrb[36].mxu0 %v4322_v10 }
  0x80   : > { %1660 = vmatmul.mubr.bf16.gmra.mrb[36].mxu1 %v4323_v11  ;;  %1506 = vmatprep.mubr.bf16.mxu0 %v4324_v12 }
  0x81   : > { %1667 = vmatprep.mubr.bf16.mxu1 %v4326_v13 }
  0x87   : > { %1507 = vmatmul.mubr.bf16.gmra.mrb[40].mxu0 %v4328_v14 }
  0x88   : > { %1668 = vmatmul.mubr.bf16.gmra.mrb[40].mxu1 %v4329_v15  ;;  %1514 = vmatprep.mubr.bf16.mxu0 %v4330_v16 }
  0x89   : > { %1675 = vmatprep.mubr.bf16.mxu1 %v4332_v17 }
  0x8f   : > { %1515 = vmatmul.mubr.bf16.gmra.mrb[44].mxu0 %v4334_v18 }
  0x90   : > { %1676 = vmatmul.mubr.bf16.gmra.mrb[44].mxu1 %v4335_v19  ;;  %1522 = vmatprep.mubr.bf16.mxu0 %v4336_v20 }
  0x91   : > { %1683 = vmatprep.mubr.bf16.mxu1 %v4338_v21 }
  0x97   : > { %1523 = vmatmul.mubr.bf16.gmra.mrb[48].mxu0 %v4340_v22 }
  0x98   : > { %1684 = vmatmul.mubr.bf16.gmra.mrb[48].mxu1 %v4341_v23  ;;  %1530 = vmatprep.mubr.bf16.mxu0 %v4343_v24 }
  0x99   : > { %1691 = vmatprep.mubr.bf16.mxu1 %v4345_v25 }
  0x9f   : > { %1531 = vmatmul.mubr.bf16.gmra.mrb[52].mxu0 %v4347_v26 }
  0xa0   : > { %1692 = vmatmul.mubr.bf16.gmra.mrb[52].mxu1 %v4348_v27  ;;  %1538 = vmatprep.mubr.bf16.mxu0 %v4349_v28 }
  0xa1   : > { %1699 = vmatprep.mubr.bf16.mxu1 %v4351_v29 }
  0xa7   : > { %1539 = vmatmul.mubr.bf16.gmra.mrb[56].mxu0 %v4353_v30 }
  0xa8   : > { %1700 = vmatmul.mubr.bf16.gmra.mrb[56].mxu1 %v4354_v31  ;;  %1546 = vmatprep.mubr.bf16.mxu0 %v4355_v32 }
  0xa9   : > { %1707 = vmatprep.mubr.bf16.mxu1 %v4357_v33 }
  0xaf   : > { %1547 = vmatmul.mubr.bf16.gmra.mrb[60].mxu0 %v4359_v34 }
  0xb0   : > { %1708 = vmatmul.mubr.bf16.gmra.mrb[60].mxu1 %v4360_v35  ;;  %3981 = vmatprep.mubr.msk.bf16.mxu0 %vm1345_vm0, %v4361_v36 }
  0xb7   : > { %3982 = vmatmul.mubr.msk.bf16.vlgmr.msra.gmra.mrb[64].mxu0 %vm1345_vm0, %v4362_v37 }
  0xb8   : > { %3985 = vmatprep.mubr.msk.bf16.mxu0 %vm1345_vm0, %v4363_v38 }
  0xbf   : > { %3986 = vmatmul.mubr.msk.bf16.gmra.mrb[68].mxu0 %vm1345_vm0, %v4364_v39 }
  0xc0   : > { %3989 = vmatprep.mubr.msk.bf16.mxu0 %vm1345_vm0, %v4365_v40 }
  0xc7   : > { %3990 = vmatmul.mubr.msk.bf16.gmra.mrb[72].mxu0 %vm1345_vm0, %v4366_v41  ;;  %v4382_v41 = vld [vmem:[%s5396_s5 + $0x28] sm:$0xff]  }
  0xc8   : > { %3993 = vmatprep.mubr.msk.bf16.mxu0 %vm1345_vm0, %v4367_v42  ;;  %4023 = vmatprep.subr.bf16.mxu1 %v4382_v41 }
  0xc9   : > { %4024 = vmatpush3.bf16.msra.mxu1 %v4382_v41 }
  0xcf   : > { %3994 = vmatmul.mubr.msk.bf16.gmra.mrb[76].mxu0 %vm1345_vm0, %v4368_v43 }
  0xd0   : > { %3997 = vmatprep.mubr.msk.bf16.mxu0 %vm1345_vm0, %v4369_v44 }
  0xd7   : > { %3998 = vmatmul.mubr.msk.bf16.gmra.mrb[80].mxu0 %vm1345_vm0, %v4370_v46 }
  0xd8   : > { %4001 = vmatprep.mubr.msk.bf16.mxu0 %vm1345_vm0, %v4371_v47 }
  0xdf   : > { %4002 = vmatmul.mubr.msk.bf16.gmra.mrb[84].mxu0 %vm1345_vm0, %v4372_v48 }
  0xe0   : > { %4005 = vmatprep.mubr.msk.bf16.mxu0 %vm1345_vm0, %v4373_v49 }
  0xe7   : > { %4006 = vmatmul.mubr.msk.bf16.gmra.mrb[88].mxu0 %vm1345_vm0, %v4374_v51 }
  0xe8   : > { %4009 = vmatprep.mubr.msk.bf16.mxu0 %vm1345_vm0, %v4375_v52 }
  0xef   : > { %4010 = vmatmul.mubr.msk.bf16.gmra.mrb[92].mxu0 %vm1345_vm0, %v4376_v53 }
 0x10a   : > { %v3678_v56 = vpop.f32.mrb[0].mxu0 }
 0x10b   : > { %v3790_v57 = vpop.f32.mrb[0].mxu1  ;;  %v3679_v58 = vpop.f32.mrb[1].mxu0 }
 0x10c   : > { %v3680_v59 = vadd.f32 %v3679_v58, %v3678_v56  ;;  %v3791_v60 = vpop.f32.mrb[1].mxu1  ;;  %v3681_v61 = vpop.f32.mrb[2].mxu0 }
 0x10d   : > { %v3792_v62 = vadd.f32 %v3791_v60, %v3790_v57  ;;  %v3793_v63 = vpop.f32.mrb[2].mxu1  ;;  %v3682_v0 = vpop.f32.mrb[3].mxu0 }
 0x10e   : > { %v3683_v1 = vadd.f32 %v3682_v0, %v3681_v61  ;;  %v3794_v2 = vpop.f32.mrb[3].mxu1 }
 0x10f   : > { %v3795_v3 = vadd.f32 %v3794_v2, %v3793_v63  ;;  %v4850_v4 = vadd.f32 %v3792_v62, %v3680_v59 }
 0x111   : > { %v4852_v5 = vadd.f32 %v3795_v3, %v3683_v1  ;;  %v4383_v1 = vld [vmem:[%s5396_s5 + $0x30] sm:$0xff]  }
 0x112   : > { %v3684_v6 = vpop.f32.mrb[4].mxu0  ;;  %4025 = vmatprep.subr.bf16.mxu1 %v4383_v1 }
 0x113   : > { %v3796_v8 = vpop.f32.mrb[4].mxu1  ;;  %v3685_v9 = vpop.f32.mrb[5].mxu0  ;;  %4026 = vmatpush3.bf16.msra.mxu1 %v4383_v1 }
 0x114   : > { %v3686_v10 = vadd.f32 %v3685_v9, %v3684_v6  ;;  %v3797_v11 = vpop.f32.mrb[5].mxu1  ;;  %v3687_v12 = vpop.f32.mrb[6].mxu0 }
 0x115   : > { %v3798_v13 = vadd.f32 %v3797_v11, %v3796_v8  ;;  %v3799_v14 = vpop.f32.mrb[6].mxu1  ;;  %v3688_v15 = vpop.f32.mrb[7].mxu0 }
 0x116   : > { %v3689_v16 = vadd.f32 %v3688_v15, %v3687_v12  ;;  %v3800_v17 = vpop.f32.mrb[7].mxu1 }
 0x117   : > { %v3801_v18 = vadd.f32 %v3800_v17, %v3799_v14  ;;  %v4857_v19 = vadd.f32 %v3798_v13, %v3686_v10 }
 0x119   : > { %v4859_v20 = vadd.f32 %v3801_v18, %v3689_v16 }
 0x11a   : > { %v3690_v21 = vpop.f32.mrb[8].mxu0 }
 0x11b   : > { %v3802_v22 = vpop.f32.mrb[8].mxu1  ;;  %v3691_v23 = vpop.f32.mrb[9].mxu0 }
 0x11c   : > { %v3692_v24 = vadd.f32 %v3691_v23, %v3690_v21  ;;  %v3803_v25 = vpop.f32.mrb[9].mxu1  ;;  %v3693_v26 = vpop.f32.mrb[10].mxu0 }
 0x11d   : > { %v3804_v27 = vadd.f32 %v3803_v25, %v3802_v22  ;;  %v3805_v28 = vpop.f32.mrb[10].mxu1  ;;  %v3694_v29 = vpop.f32.mrb[11].mxu0 }
 0x11e   : > { %v3695_v30 = vadd.f32 %v3694_v29, %v3693_v26  ;;  %v3806_v31 = vpop.f32.mrb[11].mxu1 }
 0x11f   : > { %v3807_v32 = vadd.f32 %v3806_v31, %v3805_v28  ;;  %v4861_v33 = vadd.f32 %v3804_v27, %v3692_v24 }
 0x121   : > { %v4863_v34 = vadd.f32 %v3807_v32, %v3695_v30 }
 0x122   : > { %v3696_v35 = vpop.f32.mrb[12].mxu0 }
 0x123   : > { %v3808_v36 = vpop.f32.mrb[12].mxu1  ;;  %v3697_v37 = vpop.f32.mrb[13].mxu0 }
 0x124   : > { %v3698_v38 = vadd.f32 %v3697_v37, %v3696_v35  ;;  %v3809_v39 = vpop.f32.mrb[13].mxu1  ;;  %v3699_v40 = vpop.f32.mrb[14].mxu0 }
 0x125   : > { %v3810_v42 = vadd.f32 %v3809_v39, %v3808_v36  ;;  %v3811_v43 = vpop.f32.mrb[14].mxu1  ;;  %v3700_v44 = vpop.f32.mrb[15].mxu0 }
 0x126   : > { %v3701_v45 = vadd.f32 %v3700_v44, %v3699_v40  ;;  %v3812_v46 = vpop.f32.mrb[15].mxu1 }
 0x127   : > { %v3813_v47 = vadd.f32 %v3812_v46, %v3811_v43  ;;  %v4868_v48 = vadd.f32 %v3810_v42, %v3698_v38 }
 0x129   : > { %v4870_v49 = vadd.f32 %v3813_v47, %v3701_v45 }
 0x12a   : > { %v3702_v50 = vpop.f32.mrb[16].mxu0 }
 0x12b   : > { %v3814_v51 = vpop.f32.mrb[16].mxu1  ;;  %v3703_v52 = vpop.f32.mrb[17].mxu0 }
 0x12c   : > { %v3704_v53 = vadd.f32 %v3703_v52, %v3702_v50  ;;  %v3815_v54 = vpop.f32.mrb[17].mxu1  ;;  %v3705_v55 = vpop.f32.mrb[18].mxu0  ;;  %v4384_v50 = vld [vmem:[%s5396_s5 + $0x38] sm:$0xff]  }
 0x12d   : > { %v3816_v56 = vadd.f32 %v3815_v54, %v3814_v51  ;;  %v3817_v57 = vpop.f32.mrb[18].mxu1  ;;  %v3706_v58 = vpop.f32.mrb[19].mxu0  ;;  %4027 = vmatprep.subr.bf16.mxu1 %v4384_v50 }
 0x12e   : > { %v3707_v59 = vadd.f32 %v3706_v58, %v3705_v55  ;;  %v3818_v60 = vpop.f32.mrb[19].mxu1  ;;  %4028 = vmatpush3.bf16.msra.mxu1 %v4384_v50 }
 0x12f   : > { %v3819_v61 = vadd.f32 %v3818_v60, %v3817_v57  ;;  %v4872_v62 = vadd.f32 %v3816_v56, %v3704_v53 }
 0x131   : > { %v4874_v63 = vadd.f32 %v3819_v61, %v3707_v59 }
 0x132   : > { %v3708_v0 = vpop.f32.mrb[20].mxu0 }
 0x133   : > { %v3820_v2 = vpop.f32.mrb[20].mxu1  ;;  %v3709_v3 = vpop.f32.mrb[21].mxu0 }
 0x134   : > { %v3710_v6 = vadd.f32 %v3709_v3, %v3708_v0  ;;  %v3821_v7 = vpop.f32.mrb[21].mxu1  ;;  %v3711_v8 = vpop.f32.mrb[22].mxu0 }
 0x135   : > { %v3822_v9 = vadd.f32 %v3821_v7, %v3820_v2  ;;  %v3823_v10 = vpop.f32.mrb[22].mxu1  ;;  %v3712_v11 = vpop.f32.mrb[23].mxu0 }
 0x136   : > { %v3713_v12 = vadd.f32 %v3712_v11, %v3711_v8  ;;  %v3824_v13 = vpop.f32.mrb[23].mxu1 }
 0x137   : > { %v3825_v14 = vadd.f32 %v3824_v13, %v3823_v10  ;;  %v4879_v15 = vadd.f32 %v3822_v9, %v3710_v6 }
 0x139   : > { %v4881_v16 = vadd.f32 %v3825_v14, %v3713_v12 }
 0x13a   : > { %v3714_v17 = vpop.f32.mrb[24].mxu0 }
 0x13b   : > { %v3826_v18 = vpop.f32.mrb[24].mxu1  ;;  %v3715_v21 = vpop.f32.mrb[25].mxu0 }
 0x13c   : > { %v3716_v22 = vadd.f32 %v3715_v21, %v3714_v17  ;;  %v3827_v23 = vpop.f32.mrb[25].mxu1  ;;  %v3717_v24 = vpop.f32.mrb[26].mxu0  ;;  %v4385_v17 = vld [vmem:[%s5401_s10 + $0x68] sm:$0xff]  }
 0x13d   : > { %v3828_v25 = vadd.f32 %v3827_v23, %v3826_v18  ;;  %v3829_v26 = vpop.f32.mrb[26].mxu1  ;;  %v3718_v27 = vpop.f32.mrb[27].mxu0 }
 0x13e   : > { %v3719_v28 = vadd.f32 %v3718_v27, %v3717_v24  ;;  %v3830_v29 = vpop.f32.mrb[27].mxu1 }
 0x13f   : > { %v3831_v30 = vadd.f32 %v3830_v29, %v3829_v26  ;;  %v4883_v31 = vadd.f32 %v3828_v25, %v3716_v22  ;;  %v4483_v22 = vmov 0.0  }
 0x140   : > { %4073 = vmatprep.subr.bf16.mxu0 %v4483_v22  ;;  %4037 = vmatprep.subr.bf16.mxu1 %v4483_v22 }
 0x141   : > { %v4885_v32 = vadd.f32 %v3831_v30, %v3719_v28  ;;  %4074 = vmatpush3.bf16.msra.mxu0 %v4385_v17  ;;  %4075 = vmatprep.mubr.msk.bf16.mxu0 %vm4484_vm1, %v4483_v22 }
 0x142   : > { %v3720_v35 = vpop.f32.mrb[28].mxu0  ;;  %4085 = vmatprep.subr.bf16.mxu0 %v4483_v22 }
 0x143   : > { %v3832_v36 = vpop.f32.mrb[28].mxu1  ;;  %v3721_v37 = vpop.f32.mrb[29].mxu0 }
 0x144   : > { %v3722_v38 = vadd.f32 %v3721_v37, %v3720_v35  ;;  %v3833_v39 = vpop.f32.mrb[29].mxu1  ;;  %v3723_v40 = vpop.f32.mrb[30].mxu0 }
 0x145   : > { %v3834_v41 = vadd.f32 %v3833_v39, %v3832_v36  ;;  %v3835_v42 = vpop.f32.mrb[30].mxu1  ;;  %v3724_v43 = vpop.f32.mrb[31].mxu0 }
 0x146   : > { %v3725_v44 = vadd.f32 %v3724_v43, %v3723_v40  ;;  %v3836_v45 = vpop.f32.mrb[31].mxu1 }
 0x147   : > { %v3837_v46 = vadd.f32 %v3836_v45, %v3835_v42  ;;  %v4887_v47 = vadd.f32 %v3834_v41, %v3722_v38 }
 0x149   : > { %v4892_v51 = vadd.f32 %v3837_v46, %v3725_v44 }
 0x14a   : > { %v3726_v52 = vpop.f32.mrb[32].mxu0 }
 0x14b   : > { %v3838_v53 = vpop.f32.mrb[32].mxu1  ;;  %v3727_v54 = vpop.f32.mrb[33].mxu0 }
 0x14c   : > { %v3728_v55 = vadd.f32 %v3727_v54, %v3726_v52  ;;  %v3839_v56 = vpop.f32.mrb[33].mxu1  ;;  %v3729_v57 = vpop.f32.mrb[34].mxu0 }
 0x14d   : > { %v3840_v58 = vadd.f32 %v3839_v56, %v3838_v53  ;;  %v3841_v59 = vpop.f32.mrb[34].mxu1  ;;  %v3730_v60 = vpop.f32.mrb[35].mxu0 }
 0x14e   : > { %v3731_v61 = vadd.f32 %v3730_v60, %v3729_v57  ;;  %v3842_v0 = vpop.f32.mrb[35].mxu1 }
 0x14f   : > { %v3843_v1 = vadd.f32 %v3842_v0, %v3841_v59  ;;  %v4894_v2 = vadd.f32 %v3840_v58, %v3728_v55 }
 0x151   : > { %v4896_v3 = vadd.f32 %v3843_v1, %v3731_v61 }
 0x152   : > { %v3732_v6 = vpop.f32.mrb[36].mxu0 }
 0x153   : > { %v3844_v7 = vpop.f32.mrb[36].mxu1  ;;  %v3733_v8 = vpop.f32.mrb[37].mxu0 }
 0x154   : > { %v3734_v9 = vadd.f32 %v3733_v8, %v3732_v6  ;;  %v3845_v10 = vpop.f32.mrb[37].mxu1  ;;  %v3735_v11 = vpop.f32.mrb[38].mxu0 }
 0x155   : > { %v3846_v12 = vadd.f32 %v3845_v10, %v3844_v7  ;;  %v3847_v13 = vpop.f32.mrb[38].mxu1  ;;  %v3736_v14 = vpop.f32.mrb[39].mxu0 }
 0x156   : > { %v3737_v18 = vadd.f32 %v3736_v14, %v3735_v11  ;;  %v3848_v21 = vpop.f32.mrb[39].mxu1 }
 0x157   : > { %v3849_v23 = vadd.f32 %v3848_v21, %v3847_v13  ;;  %v4903_v24 = vadd.f32 %v3846_v12, %v3734_v9 }
 0x159   : > { %v4906_v25 = vadd.f32 %v3849_v23, %v3737_v18 }
 0x15a   : > { %v3738_v26 = vpop.f32.mrb[40].mxu0 }
 0x15b   : > { %v3850_v27 = vpop.f32.mrb[40].mxu1  ;;  %v3739_v28 = vpop.f32.mrb[41].mxu0 }
 0x15c   : > { %v3740_v29 = vadd.f32 %v3739_v28, %v3738_v26  ;;  %v3851_v30 = vpop.f32.mrb[41].mxu1  ;;  %v3741_v35 = vpop.f32.mrb[42].mxu0 }
 0x15d   : > { %v3852_v36 = vadd.f32 %v3851_v30, %v3850_v27  ;;  %v3853_v37 = vpop.f32.mrb[42].mxu1  ;;  %v3742_v38 = vpop.f32.mrb[43].mxu0 }
 0x15e   : > { %v3743_v39 = vadd.f32 %v3742_v38, %v3741_v35  ;;  %v3854_v40 = vpop.f32.mrb[43].mxu1 }
 0x15f   : > { %v3855_v41 = vadd.f32 %v3854_v40, %v3853_v37  ;;  %v4908_v42 = vadd.f32 %v3852_v36, %v3740_v29 }
 0x161   : > { %v4910_v43 = vadd.f32 %v3855_v41, %v3743_v39 }
 0x162   : > { %v3744_v44 = vpop.f32.mrb[44].mxu0 }
 0x163   : > { %v3856_v45 = vpop.f32.mrb[44].mxu1  ;;  %v3745_v46 = vpop.f32.mrb[45].mxu0 }
 0x164   : > { %v3746_v50 = vadd.f32 %v3745_v46, %v3744_v44  ;;  %v3857_v52 = vpop.f32.mrb[45].mxu1  ;;  %v3747_v53 = vpop.f32.mrb[46].mxu0 }
 0x165   : > { %v3858_v54 = vadd.f32 %v3857_v52, %v3856_v45  ;;  %v3859_v55 = vpop.f32.mrb[46].mxu1  ;;  %v3748_v56 = vpop.f32.mrb[47].mxu0 }
 0x166   : > { %v3749_v57 = vadd.f32 %v3748_v56, %v3747_v53  ;;  %v3860_v58 = vpop.f32.mrb[47].mxu1 }
 0x167   : > { %v3861_v59 = vadd.f32 %v3860_v58, %v3859_v55  ;;  %v4912_v60 = vadd.f32 %v3858_v54, %v3746_v50 }
 0x169   : > { %v4914_v61 = vadd.f32 %v3861_v59, %v3749_v57 }
 0x16a   : > { %v3750_v0 = vpop.f32.mrb[48].mxu0 }
 0x16b   : > { %v3862_v1 = vpop.f32.mrb[48].mxu1  ;;  %v3751_v6 = vpop.f32.mrb[49].mxu0 }
 0x16c   : > { %v3752_v7 = vadd.f32 %v3751_v6, %v3750_v0  ;;  %v3863_v8 = vpop.f32.mrb[49].mxu1  ;;  %v3753_v9 = vpop.f32.mrb[50].mxu0 }
 0x16d   : > { %v3864_v10 = vadd.f32 %v3863_v8, %v3862_v1  ;;  %v3865_v11 = vpop.f32.mrb[50].mxu1  ;;  %v3754_v12 = vpop.f32.mrb[51].mxu0 }
 0x16e   : > { %v3755_v13 = vadd.f32 %v3754_v12, %v3753_v9  ;;  %v3866_v14 = vpop.f32.mrb[51].mxu1 }
 0x16f   : > { %v3867_v17 = vadd.f32 %v3866_v14, %v3865_v11  ;;  %v4916_v18 = vadd.f32 %v3864_v10, %v3752_v7 }
 0x171   : > { %v4918_v21 = vadd.f32 %v3867_v17, %v3755_v13 }
 0x172   : > { %v3756_v23 = vpop.f32.mrb[52].mxu0 }
 0x173   : > { %v3868_v26 = vpop.f32.mrb[52].mxu1  ;;  %v3757_v27 = vpop.f32.mrb[53].mxu0 }
 0x174   : > { %v3758_v28 = vadd.f32 %v3757_v27, %v3756_v23  ;;  %v3869_v29 = vpop.f32.mrb[53].mxu1  ;;  %v3759_v30 = vpop.f32.mrb[54].mxu0 }
 0x175   : > { %v3870_v35 = vadd.f32 %v3869_v29, %v3868_v26  ;;  %v3871_v36 = vpop.f32.mrb[54].mxu1  ;;  %v3760_v37 = vpop.f32.mrb[55].mxu0 }
 0x176   : > { %v3761_v38 = vadd.f32 %v3760_v37, %v3759_v30  ;;  %v3872_v39 = vpop.f32.mrb[55].mxu1 }
 0x177   : > { %v3873_v40 = vadd.f32 %v3872_v39, %v3871_v36  ;;  %v4920_v41 = vadd.f32 %v3870_v35, %v3758_v28 }
 0x179   : > { %v4922_v44 = vadd.f32 %v3873_v40, %v3761_v38 }
 0x17a   : > { %v3762_v45 = vpop.f32.mrb[56].mxu0 }
 0x17b   : > { %v3874_v46 = vpop.f32.mrb[56].mxu1  ;;  %v3763_v50 = vpop.f32.mrb[57].mxu0 }
 0x17c   : > { %v3764_v52 = vadd.f32 %v3763_v50, %v3762_v45  ;;  %v3875_v53 = vpop.f32.mrb[57].mxu1  ;;  %v3765_v54 = vpop.f32.mrb[58].mxu0 }
 0x17d   : > { %v3876_v55 = vadd.f32 %v3875_v53, %v3874_v46  ;;  %v3877_v56 = vpop.f32.mrb[58].mxu1  ;;  %v3766_v57 = vpop.f32.mrb[59].mxu0 }
 0x17e   : > { %v3767_v58 = vadd.f32 %v3766_v57, %v3765_v54  ;;  %v3878_v59 = vpop.f32.mrb[59].mxu1 }
 0x17f   : > { %v3879_v0 = vadd.f32 %v3878_v59, %v3877_v56  ;;  %v4924_v1 = vadd.f32 %v3876_v55, %v3764_v52 }
 0x181   : > { %v4926_v6 = vadd.f32 %v3879_v0, %v3767_v58 }
 0x182   : > { %v3768_v7 = vpop.f32.mrb[60].mxu0 }
 0x183   : > { %v3880_v8 = vpop.f32.mrb[60].mxu1  ;;  %v3769_v9 = vpop.f32.mrb[61].mxu0 }
 0x184   : > { %v3770_v10 = vadd.f32 %v3769_v9, %v3768_v7  ;;  %v3881_v11 = vpop.f32.mrb[61].mxu1  ;;  %v3771_v12 = vpop.f32.mrb[62].mxu0 }
 0x185   : > { %v3882_v13 = vadd.f32 %v3881_v11, %v3880_v8  ;;  %v3883_v14 = vpop.f32.mrb[62].mxu1  ;;  %v3772_v17 = vpop.f32.mrb[63].mxu0 }
 0x186   : > { %v3773_v23 = vadd.f32 %v3772_v17, %v3771_v12  ;;  %v3884_v26 = vpop.f32.mrb[63].mxu1 }
 0x187   : > { %v3885_v27 = vadd.f32 %v3884_v26, %v3883_v14  ;;  %v4928_v28 = vadd.f32 %v3882_v13, %v3770_v10 }
 0x189   : > { %v4930_v29 = vadd.f32 %v3885_v27, %v3773_v23 }
 0x18a   : > { %v3983_v30 = vpop.f32.mrb[64].mxu0 }
 0x18b   : > { %v1759_v35 = vadd.f32 %v3983_v30, %v4857_v19  ;;  %v1750_v36 = vpop.f32.mrb[65].mxu0 }
 0x18c   : > { %v1751_v37 = vadd.f32 %v1750_v36, %v4850_v4  ;;  %v3984_v38 = vpop.f32.mrb[66].mxu0  ;;  %v4943_v4 = vld [vmem:[%s5394_s3] ss:$0 sm:$0xff] }
 0x18d   : > { %v1762_v39 = vadd.f32 %v3984_v38, %v4859_v20  ;;  %v1753_v40 = vpop.f32.mrb[67].mxu0 }
 0x18e   : > { %v1754_v45 = vadd.f32 %v1753_v40, %v4852_v5  ;;  %v1886_v5 = vmul.f32 %v4943_v4, %v1759_v35 }
 0x18f   : > { %v1887_v59 = vmul.f32 %v4943_v4, %v1762_v39 }
 0x192   : > { %v3987_v46 = vpop.f32.mrb[68].mxu0 }
 0x193   : > { %v1775_v50 = vadd.f32 %v3987_v46, %v4868_v48  ;;  %v1766_v52 = vpop.f32.mrb[69].mxu0 }
 0x194   : > { %v1767_v53 = vadd.f32 %v1766_v52, %v4861_v33  ;;  %v3988_v54 = vpop.f32.mrb[70].mxu0  ;;  %v4950_v33 = vld [vmem:[%s5395_s4] ss:$0 sm:$0xff] }
 0x195   : > { %v1778_v55 = vadd.f32 %v3988_v54, %v4870_v49  ;;  %v1769_v56 = vpop.f32.mrb[71].mxu0  ;;  %v1884_v49 = vmul.f32 %v4943_v4, %v1751_v37  ;;  %v4961_v11 = vadd.f32 %v4950_v33, %v1886_v5  ;;  %v4975_v17 = vadd.f32 %v4950_v33, %v1887_v59 }
 0x196   : > { %v1770_v19 = vadd.f32 %v1769_v56, %v4863_v34  ;;  %v1890_v36 = vmul.f32 %v4943_v4, %v1775_v50  ;;  %v1888_v40 = vmul.f32 %v4943_v4, %v1767_v53 }
 0x197   : > { %v4968_v13 = vadd.f32 %v4950_v33, %v1884_v49  ;;  %v1891_v54 = vmul.f32 %v4943_v4, %v1778_v55 }
 0x198   : > { %v1889_v5 = vmul.f32 %v4943_v4, %v1770_v19  ;;  %v5005_v53 = vadd.f32 %v4950_v33, %v1890_v36  ;;  %v5012_v55 = vadd.f32 %v4950_v33, %v1888_v40 }
 0x199   : > { %v5019_v49 = vadd.f32 %v4950_v33, %v1891_v54 }
 0x19a   : > { %v3991_v20 = vpop.f32.mrb[72].mxu0 }
 0x19b   : > { %v1791_v57 = vadd.f32 %v3991_v20, %v4879_v15  ;;  %v1782_v48 = vpop.f32.mrb[73].mxu0  ;;  %v1885_v15 = vmul.f32 %v4943_v4, %v1754_v45 }
 0x19c   : > { %v1783_v34 = vadd.f32 %v1782_v48, %v4872_v62  ;;  %v3992_v58 = vpop.f32.mrb[74].mxu0 }
 0x19d   : > { %v1894_v0 = vmul.f32 %v4943_v4, %v1791_v57  ;;  %v1794_v7 = vadd.f32 %v3992_v58, %v4881_v16  ;;  %v1785_v8 = vpop.f32.mrb[75].mxu0  ;;  %v4983_v26 = vadd.f32 %v4950_v33, %v1885_v15  ;;  %v5027_v58 = vadd.f32 %v4950_v33, %v1889_v5 }
 0x19e   : > { %v1892_v9 = vmul.f32 %v4943_v4, %v1783_v34  ;;  %v1786_v10 = vadd.f32 %v1785_v8, %v4874_v63 }
 0x19f   : > { %v4964_v12 = vadd.f32 %v4950_v33, %v1894_v0  ;;  %v1895_v62 = vmul.f32 %v4943_v4, %v1794_v7 }
 0x1a0   : > { %v4971_v16 = vadd.f32 %v4950_v33, %v1892_v9  ;;  %v1893_v14 = vmul.f32 %v4943_v4, %v1786_v10 }
 0x1a1   : > { %v1957_v63 = vmax.f32 %v4961_v11, %v4964_v12  ;;  %v4980_v23 = vadd.f32 %v4950_v33, %v1895_v62 }
 0x1a2   : > { %v1955_v27 = vmax.f32 %v4968_v13, %v4971_v16  ;;  %v4988_v30 = vadd.f32 %v4950_v33, %v1893_v14  ;;  %v3995_v35 = vpop.f32.mrb[76].mxu0 }
 0x1a3   : > { %v1958_v37 = vmax.f32 %v4975_v17, %v4980_v23  ;;  %v1807_v38 = vadd.f32 %v3995_v35, %v4887_v47  ;;  %v1798_v39 = vpop.f32.mrb[77].mxu0 }
 0x1a4   : > { %v1956_v45 = vmax.f32 %v4983_v26, %v4988_v30  ;;  %v1799_v46 = vadd.f32 %v1798_v39, %v4883_v31  ;;  %v3996_v52 = vpop.f32.mrb[78].mxu0 }
 0x1a5   : > { %v1898_v56 = vmul.f32 %v4943_v4, %v1807_v38  ;;  %v1810_v50 = vadd.f32 %v3996_v52, %v4892_v51  ;;  %v1801_v20 = vpop.f32.mrb[79].mxu0 }
 0x1a6   : > { %v1896_v47 = vmul.f32 %v4943_v4, %v1799_v46  ;;  %v1802_v57 = vadd.f32 %v1801_v20, %v4885_v32 }
 0x1a7   : > { %v5008_v48 = vadd.f32 %v4950_v33, %v1898_v56  ;;  %v1899_v31 = vmul.f32 %v4943_v4, %v1810_v50 }
 0x1a8   : > { %v5015_v51 = vadd.f32 %v4950_v33, %v1896_v47  ;;  %v1897_v19 = vmul.f32 %v4943_v4, %v1802_v57 }
 0x1a9   : > { %v1961_v32 = vmax.f32 %v5005_v53, %v5008_v48  ;;  %v5024_v34 = vadd.f32 %v4950_v33, %v1899_v31 }
 0x1aa   : > { %v1959_v59 = vmax.f32 %v5012_v55, %v5015_v51  ;;  %v5032_v0 = vadd.f32 %v4950_v33, %v1897_v19  ;;  %v3999_v7 = vpop.f32.mrb[80].mxu0  ;;  %v4386_v55 = vld [vmem:[%s5401_s10 + $0x8] sm:$0xff]   ;;  %v3574_v51 = vld [vmem:[%s5397_s6] ss:$0 sm:$0xff] }
 0x1ab   : > { %v1962_v8 = vmax.f32 %v5019_v49, %v5024_v34  ;;  %v1823_v15 = vadd.f32 %v3999_v7, %v4903_v24  ;;  %v1814_v9 = vpop.f32.mrb[81].mxu0  ;;  %v3575_v34 = vld [vmem:[%s5398_s7] ss:$0 sm:$0xff] }
 0x1ac   : > { %v1960_v10 = vmax.f32 %v5027_v58, %v5032_v0  ;;  %v1815_v62 = vadd.f32 %v1814_v9, %v4894_v2  ;;  %v4000_v14 = vpop.f32.mrb[82].mxu0 }
 0x1ad   : > { %v1826_v35 = vadd.f32 %v4000_v14, %v4906_v25  ;;  %v1817_v36 = vpop.f32.mrb[83].mxu0  ;;  %v1902_v2 = vmul.f32 %v4943_v4, %v1823_v15 }
 0x1ae   : > { %v1818_v38 = vadd.f32 %v1817_v36, %v4896_v3  ;;  %v1900_v3 = vmul.f32 %v4943_v4, %v1815_v62 }
 0x1af   : > { %v1903_v57 = vmul.f32 %v4943_v4, %v1826_v35 }
 0x1b0   : > { %v1939_v62 = vadd.f32 %v4950_v33, %v1900_v3 }
 0x1b1   : > { %v1942_v35 = vadd.f32 %v4950_v33, %v1903_v57 }
 0x1b2   : > { %v4003_v39 = vpop.f32.mrb[84].mxu0 }
 0x1b3   : > { %v1839_v40 = vadd.f32 %v4003_v39, %v4912_v60  ;;  %v1830_v46 = vpop.f32.mrb[85].mxu0 }
 0x1b4   : > { %v1831_v52 = vadd.f32 %v1830_v46, %v4908_v42  ;;  %v4004_v54 = vpop.f32.mrb[86].mxu0 }
 0x1b5   : > { %v1842_v24 = vadd.f32 %v4004_v54, %v4914_v61  ;;  %v1833_v56 = vpop.f32.mrb[87].mxu0  ;;  %v1906_v15 = vmul.f32 %v4943_v4, %v1839_v40 }
 0x1b6   : > { %v1834_v50 = vadd.f32 %v1833_v56, %v4910_v43  ;;  %v1901_v43 = vmul.f32 %v4943_v4, %v1818_v38  ;;  %v1904_v36 = vmul.f32 %v4943_v4, %v1831_v52 }
 0x1b7   : > { %v1945_v56 = vadd.f32 %v4950_v33, %v1906_v15  ;;  %v1907_v52 = vmul.f32 %v4943_v4, %v1842_v24 }
 0x1b8   : > { %v1940_v39 = vadd.f32 %v4950_v33, %v1901_v43  ;;  %v1905_v24 = vmul.f32 %v4943_v4, %v1834_v50 }
 0x1b9   : > { %v1946_v43 = vadd.f32 %v4950_v33, %v1907_v52 }
 0x1ba   : > { %v4007_v20 = vpop.f32.mrb[88].mxu0  ;;  %v1944_v26 = vadd.f32 %v4950_v33, %v1905_v24 }
 0x1bb   : > { %v1855_v25 = vadd.f32 %v4007_v20, %v4920_v41  ;;  %v1846_v5 = vpop.f32.mrb[89].mxu0  ;;  %v1941_v41 = vadd.f32 %v4950_v33, %v1902_v2 }
 0x1bc   : > { %v1847_v47 = vadd.f32 %v1846_v5, %v4916_v18  ;;  %v4008_v60 = vpop.f32.mrb[90].mxu0 }
 0x1bd   : > { %v1910_v42 = vmul.f32 %v4943_v4, %v1855_v25  ;;  %v1858_v61 = vadd.f32 %v4008_v60, %v4922_v44  ;;  %v1849_v31 = vpop.f32.mrb[91].mxu0 }
 0x1be   : > { %v1908_v19 = vmul.f32 %v4943_v4, %v1847_v47  ;;  %v1850_v7 = vadd.f32 %v1849_v31, %v4918_v21 }
 0x1bf   : > { %v1949_v18 = vadd.f32 %v4950_v33, %v1910_v42  ;;  %v1911_v9 = vmul.f32 %v4943_v4, %v1858_v61  ;;  %v1943_v42 = vadd.f32 %v4950_v33, %v1904_v36 }
 0x1c0   : > { %v1947_v14 = vadd.f32 %v4950_v33, %v1908_v19  ;;  %v1909_v44 = vmul.f32 %v4943_v4, %v1850_v7 }
 0x1c1   : > { %v1965_v38 = vmax.f32 %v1941_v41, %v1949_v18  ;;  %v1950_v21 = vadd.f32 %v4950_v33, %v1911_v9 }
 0x1c2   : > { %v1963_v40 = vmax.f32 %v1939_v62, %v1947_v14  ;;  %v1948_v46 = vadd.f32 %v4950_v33, %v1909_v44  ;;  %v4011_v54 = vpop.f32.mrb[92].mxu0 }
 0x1c3   : > { %v1973_v20 = vmax.f32 %v1957_v63, %v1965_v38  ;;  %v1966_v2 = vmax.f32 %v1942_v35, %v1950_v21  ;;  %v1871_v25 = vadd.f32 %v4011_v54, %v4928_v28  ;;  %v1862_v5 = vpop.f32.mrb[93].mxu0 }
 0x1c4   : > { %v1964_v3 = vmax.f32 %v1940_v39, %v1948_v46  ;;  %v1863_v47 = vadd.f32 %v1862_v5, %v4924_v1  ;;  %v4012_v60 = vpop.f32.mrb[94].mxu0  ;;  %v1971_v57 = vmax.f32 %v1955_v27, %v1963_v40 }
 0x1c5   : > { %v1974_v11 = vmax.f32 %v1958_v37, %v1966_v2  ;;  %v1914_v12 = vmul.f32 %v4943_v4, %v1871_v25  ;;  %v1874_v28 = vadd.f32 %v4012_v60, %v4930_v29  ;;  %v1865_v63 = vpop.f32.mrb[95].mxu0  ;;  %v1981_v16 = vmax.f32 %v1973_v20, 0.0 }
 0x1c6   : > { %v1912_v1 = vmul.f32 %v4943_v4, %v1863_v47  ;;  %v1866_v61 = vadd.f32 %v1865_v63, %v4926_v6  ;;  %v1972_v13 = vmax.f32 %v1956_v45, %v1964_v3  ;;  %v1979_v31 = vmax.f32 %v1971_v57, 0.0 }
 0x1c7   : > { %v1982_v27 = vmax.f32 %v1974_v11, 0.0  ;;  %v1953_v17 = vadd.f32 %v4950_v33, %v1914_v12  ;;  %v1915_v23 = vmul.f32 %v4943_v4, %v1874_v28 }
 0x1c8   : > { %v1951_v37 = vadd.f32 %v4950_v33, %v1912_v1  ;;  %v1913_v29 = vmul.f32 %v4943_v4, %v1866_v61  ;;  %v1980_v50 = vmax.f32 %v1972_v13, 0.0 }
 0x1c9   : > { %v1988_v19 = vpack.c.bf16 %v1982_v27, %v1981_v16  ;;  %v1969_v6 = vmax.f32 %v1945_v56, %v1953_v17  ;;  %v1954_v7 = vadd.f32 %v4950_v33, %v1915_v23  ;;  %v4388_v27 = vld [vmem:[%s5401_s10 + $0x18] sm:$0xff]   ;;  %v4387_v23 = vld [vmem:[%s5401_s10] sm:$0xff]  }
 0x1ca   : > { %v1967_v30 = vmax.f32 %v1943_v42, %v1951_v37  ;;  %v1952_v45 = vadd.f32 %v4950_v33, %v1913_v29  ;;  %v1987_v41 = vpack.c.bf16 %v1980_v50, %v1979_v31  ;;  %v4390_v29 = vld [vmem:[%s5401_s10 + $0x28] sm:$0xff]   ;;  %v4389_v50 = vld [vmem:[%s5401_s10 + $0x20] sm:$0xff]  }
 0x1cb   : > { %v1970_v15 = vmax.f32 %v1946_v43, %v1954_v7  ;;  %v1977_v18 = vmax.f32 %v1961_v32, %v1969_v6  ;;  %v4392_v43 = vld [vmem:[%s5401_s10 + $0x38] sm:$0xff]   ;;  %v4391_v6 = vld [vmem:[%s5401_s10 + $0x40] sm:$0xff]  }
 0x1cc   : > { %v1968_v4 = vmax.f32 %v1944_v26, %v1952_v45  ;;  %4029 = vmatprep.mubr.bf16.mxu1 %v1987_v41  ;;  %v1975_v9 = vmax.f32 %v1959_v59, %v1967_v30  ;;  %v4394_v26 = vld [vmem:[%s5401_s10 + $0x48] sm:$0xff]   ;;  %v4393_v45 = vld [vmem:[%s5401_s10 + $0x60] sm:$0xff]  }
 0x1cd   : > { %4030 = vmatmul.mubr.bf16.vlgmr.msra.gmra.mrb[64].mxu1 %v1988_v19  ;;  %v1978_v62 = vmax.f32 %v1962_v8, %v1970_v15  ;;  %v1985_v14 = vmax.f32 %v1977_v18, 0.0  ;;  %v3016_v15 = vld [vmem:[%s5399_s8] sm:$0x7]  ;;  %v4395_v18 = vld [vmem:[%s5401_s10 + $0x58] sm:$0xff]  }
 0x1ce   : > { %v1976_v33 = vmax.f32 %v1960_v10, %v1968_v4  ;;  %v1983_v35 = vmax.f32 %v1975_v9, 0.0  ;;  %4038 = vmatpush3.bf16.msra.mxu1 %v4386_v55  ;;  %v4399_v55 = vld [vmem:[%s5401_s10 + $0x50] sm:$0xff]  }
 0x1cf   : > { %v1986_v44 = vmax.f32 %v1978_v62, 0.0  ;;  %4043 = vmatprep.subr.bf16.mxu1 %v4483_v22  ;;  %v3024_v62 = vsel %vm3022_vm3, %v3016_v15, 0 }
 0x1d0   : > { %v1984_v53 = vmax.f32 %v1976_v33, 0.0  ;;  %v4396_v33 = vld [vmem:[%s5401_s10 + $0x78] sm:$0xff]  }
 0x1d1   : > { %v1990_v48 = vpack.c.bf16 %v1986_v44, %v1985_v14  ;;  %v3015_v44 = vld [vmem:[%s559_s17] sm:$0x1]  ;;  %s4423_s17 = sshll.u32 %s4485_s0, 4  ;;  %s4424_s17 = int_to_ptr.vmem [resolvable:$false] %s4423_s17 }
 0x1d2   : > { %v1989_v32 = vpack.c.bf16 %v1984_v53, %v1983_v35  ;;  %v4397_v35 = vld [vmem:[%s5401_s10 + $0x10] sm:$0xff]   ;;  %s4425_s29 = scalar_lea.vmem %s4424_s17, 32  ;;  %p4426_p0 = scmp.lt.s32.totalorder %s5351_s24, %s4424_s17 }
 0x1d3   : > { %p4427_p1 = scmp.lt.s32.totalorder %s4425_s29, %s4419_s19 }
 0x1d4   : > { %4033 = vmatprep.mubr.bf16.mxu1 %v1989_v32 }
 0x1d5   : > { %4034 = vmatmul.mubr.bf16.gmra.mrb[68].mxu1 %v1990_v48  ;;  %v4398_v48 = vld [vmem:[%s5401_s10 + $0x30] sm:$0xff]   ;;  %p4428_p2 = por %p4427_p1, %p4426_p0 }
 0x1d6   : > { %4039 = vmatprep.mubr.msk.bf16.mxu1 %vm4484_vm1, %v4483_v22 }
 0x1d7   : > { %p4429_p3 = pnand %p4428_p2, %p4422_p13 }
 0x2a0   : > { %v4031_v49 = vpop.f32.mrb[64].mxu1 }
 0x2a1   : > { %v2129_v58 = vmul.f32 %v4031_v49, %v3574_v51  ;;  %v2089_v59 = vpop.f32.mrb[65].mxu1  ;;  %v4400_v49 = vld [vmem:[%s5401_s10 + $0x70] sm:$0xff]  }
 0x2a2   : > { %v2127_v0 = vmul.f32 %v3574_v51, %v2089_v59  ;;  %v4032_v8 = vpop.f32.mrb[66].mxu1  ;;  %v4401_v59 = vld [vmem:[%s5402_s11] sm:$0xff]  }
 0x2a3   : > { %v2144_v10 = vadd.f32 %v3575_v34, %v2129_v58  ;;  %v2130_v36 = vmul.f32 %v4032_v8, %v3574_v51  ;;  %v2092_v38 = vpop.f32.mrb[67].mxu1  ;;  %v4403_v8 = vld [vmem:[%s5402_s11 + $0x10] sm:$0xff]  }
 0x2a4   : > { %v2142_v21 = vadd.f32 %v3575_v34, %v2127_v0  ;;  %v2128_v39 = vmul.f32 %v3574_v51, %v2092_v38  ;;  %v4402_v0 = vld [vmem:[%s5402_s11 + $0x8] sm:$0xff]  }
 0x2a5   : > { %v2145_v40 = vadd.f32 %v3575_v34, %v2130_v36  ;;  %v4405_v36 = vld [vmem:[%s5402_s11 + $0x20] sm:$0xff]   ;;  %v4406_v38 = vld [vmem:[%s5402_s11 + $0x28] sm:$0xff]  }
 0x2a6   : > { %v2150_v46 = vmax.f32 %v2142_v21, %v2144_v10  ;;  %v2143_v54 = vadd.f32 %v3575_v34, %v2128_v39  ;;  %v4404_v10 = vld [vmem:[%s5402_s11 + $0x18] sm:$0xff]   ;;  %v4407_v21 = vld [vmem:[%s5404_s13] sm:$0xff]   ;;  %v4408_v39 = vld [vmem:[%s5404_s13 + $0x8] sm:$0xff]  }
 0x2a8   : > { %v2151_v56 = vmax.f32 %v2143_v54, %v2145_v40  ;;  %v4035_v20 = vpop.f32.mrb[68].mxu1  ;;  %v4409_v40 = vld [vmem:[%s5404_s13 + $0x10] sm:$0xff]   ;;  %v4411_v54 = vld [vmem:[%s5404_s13 + $0x20] sm:$0xff]  }
 0x2a9   : > { %v2133_v2 = vmul.f32 %v4035_v20, %v3574_v51  ;;  %v2105_v25 = vpop.f32.mrb[69].mxu1 }
 0x2aa   : > { %v2131_v5 = vmul.f32 %v3574_v51, %v2105_v25  ;;  %v4036_v52 = vpop.f32.mrb[70].mxu1 }
 0x2ab   : > { %v2148_v3 = vadd.f32 %v3575_v34, %v2133_v2  ;;  %v2134_v47 = vmul.f32 %v4036_v52, %v3574_v51  ;;  %v2108_v60 = vpop.f32.mrb[71].mxu1 }
 0x2ac   : > { %v2146_v57 = vadd.f32 %v3575_v34, %v2131_v5  ;;  %v2132_v42 = vmul.f32 %v3574_v51, %v2108_v60 }
 0x2ad   : > { %v2149_v11 = vadd.f32 %v3575_v34, %v2134_v47 }
 0x2ae   : > { %v2152_v12 = vmax.f32 %v2146_v57, %v2148_v3  ;;  %v2147_v28 = vadd.f32 %v3575_v34, %v2132_v42 }
 0x2b0   : > { %v2154_v63 = vmax.f32 %v2150_v46, %v2152_v12  ;;  %v2153_v24 = vmax.f32 %v2147_v28, %v2149_v11  ;;  %v4410_v46 = vld [vmem:[%s5404_s13 + $0x18] sm:$0xff]  }
 0x2b2   : > { %v2155_v1 = vmax.f32 %v2151_v56, %v2153_v24  ;;  %v2156_v61 = vmax.f32 %v2154_v63, 0.0  ;;  %v4412_v56 = vld [vmem:[%s5404_s13 + $0x28] sm:$0xff]  }
 0x2b4   : > { %v2157_v13 = vmax.f32 %v2155_v1, 0.0 }
 0x2b6   : > { %v5124_v16 = vpack.c.bf16 %v2157_v13, %v2156_v61 }
 0x2b8   : > { %v5130_v17 = vshrl.u32 %v5124_v16, 16  ;;  %v2708_v7 = vrot.slane %v5124_v16, 2  ;;  %v2808_v41 = vrot.slane %v5124_v16, 4  ;;  %v2908_v9 = vrot.slane %v5124_v16, 6 }
 0x2b9   : > { %v2658_v32 = vrot.slane %v5124_v16, 1  ;;  %v2758_v51 = vrot.slane %v5124_v16, 3  ;;  %v2858_v34 = vrot.slane %v5124_v16, 5  ;;  %v2958_v58 = vrot.slane %v5124_v16, 7 }
 0x2ba   : > { %4040 = vmatmul.mubr.msk.bf16.vlgmr.msra.gmra.mrb[72].mxu1 %vm2173_vm2, %v5130_v17  ;;  %v2503_v37 = vrot.slane %v5130_v17, 6  ;;  %v2223_v31 = vrot.slane %v5130_v17, 1  ;;  %v2279_v19 = vrot.slane %v5130_v17, 2  ;;  %v2335_v30 = vrot.slane %v5130_v17, 3 }
 0x2bb   : > { %4044 = vmatpush3.bf16.msra.mxu1 %v4388_v27  ;;  %4045 = vmatprep.mubr.msk.bf16.mxu1 %vm4484_vm1, %v4483_v22  ;;  %v2391_v4 = vrot.slane %v5130_v17, 4  ;;  %v2447_v14 = vrot.slane %v5130_v17, 5  ;;  %v2559_v53 = vrot.slane %v5130_v17, 7 }
 0x2bc   : > { %4076 = vmatmul.mubr.msk.bf16.vlgmr.msra.gmra.mrb[96].mxu0 %vm2173_vm2, %v2503_v37  ;;  %4049 = vmatprep.subr.bf16.mxu1 %v4483_v22 }
 0x2bd   : > { %4086 = vmatpush3.bf16.msra.mxu0 %v4387_v23  ;;  %4087 = vmatprep.mubr.msk.bf16.mxu0 %vm4484_vm1, %v4483_v22 }
 0x2be   : > { %4097 = vmatprep.subr.bf16.mxu0 %v4483_v22 }
 0x2c2   : > { %4046 = vmatmul.mubr.msk.bf16.vlgmr.msra.gmra.mrb[76].mxu1 %vm2173_vm2, %v2223_v31 }
 0x2c3   : > { %4050 = vmatpush3.bf16.msra.mxu1 %v4390_v29  ;;  %4051 = vmatprep.mubr.msk.bf16.mxu1 %vm4484_vm1, %v4483_v22 }
 0x2c4   : > { %4088 = vmatmul.mubr.msk.bf16.vlgmr.msra.gmra.mrb[100].mxu0 %vm2173_vm2, %v5124_v16  ;;  %4055 = vmatprep.subr.bf16.mxu1 %v4483_v22 }
 0x2c5   : > { %4098 = vmatpush3.bf16.msra.mxu0 %v4389_v50  ;;  %4099 = vmatprep.mubr.msk.bf16.mxu0 %vm4484_vm1, %v4483_v22 }
 0x2c6   : > { %4109 = vmatprep.subr.bf16.mxu0 %v4483_v22 }
 0x2ca   : > { %4052 = vmatmul.mubr.msk.bf16.vlgmr.msra.gmra.mrb[80].mxu1 %vm2173_vm2, %v2279_v19 }
 0x2cb   : > { %4056 = vmatpush3.bf16.msra.mxu1 %v4392_v43  ;;  %4057 = vmatprep.mubr.msk.bf16.mxu1 %vm4484_vm1, %v4483_v22 }
 0x2cc   : > { %4100 = vmatmul.mubr.msk.bf16.vlgmr.msra.gmra.mrb[104].mxu0 %vm2173_vm2, %v2708_v7  ;;  %4061 = vmatprep.subr.bf16.mxu1 %v4483_v22 }
 0x2cd   : > { %4110 = vmatpush3.bf16.msra.mxu0 %v4391_v6  ;;  %4111 = vmatprep.mubr.msk.bf16.mxu0 %vm4484_vm1, %v4483_v22 }
 0x2ce   : > { %4121 = vmatprep.subr.bf16.mxu0 %v4483_v22 }
 0x2d2   : > { %4058 = vmatmul.mubr.msk.bf16.vlgmr.msra.gmra.mrb[84].mxu1 %vm2173_vm2, %v2335_v30 }
 0x2d3   : > { %4062 = vmatpush3.bf16.msra.mxu1 %v4394_v26  ;;  %4063 = vmatprep.mubr.msk.bf16.mxu1 %vm4484_vm1, %v4483_v22 }
 0x2d4   : > { %4112 = vmatmul.mubr.msk.bf16.vlgmr.msra.gmra.mrb[108].mxu0 %vm2173_vm2, %v2808_v41  ;;  %4067 = vmatprep.subr.bf16.mxu1 %v4483_v22 }
 0x2d5   : > { %4122 = vmatpush3.bf16.msra.mxu0 %v4393_v45  ;;  %4123 = vmatprep.mubr.msk.bf16.mxu0 %vm4484_vm1, %v4483_v22 }
 0x2d6   : > { %4133 = vmatprep.subr.bf16.mxu0 %v4483_v22 }
 0x2da   : > { %4064 = vmatmul.mubr.msk.bf16.vlgmr.msra.gmra.mrb[88].mxu1 %vm2173_vm2, %v2391_v4 }
 0x2db   : > { %4068 = vmatpush3.bf16.msra.mxu1 %v4395_v18  ;;  %4069 = vmatprep.mubr.msk.bf16.mxu1 %vm4484_vm1, %v4483_v22 }
 0x2dc   : > { %4124 = vmatmul.mubr.msk.bf16.vlgmr.msra.gmra.mrb[112].mxu0 %vm2173_vm2, %v2908_v9  ;;  %4079 = vmatprep.subr.bf16.mxu1 %v4483_v22 }
 0x2dd   : > { %4134 = vmatpush3.bf16.msra.mxu0 %v3024_v62  ;;  %4135 = vmatprep.mubr.msk.bf16.mxu0 %vm4484_vm1, %v4483_v22 }
 0x2de   : > { %4155 = vmatprep.subr.bf16.mxu0 %v4483_v22 }
 0x2e2   : > { %4070 = vmatmul.mubr.msk.bf16.vlgmr.msra.gmra.mrb[92].mxu1 %vm2173_vm2, %v2447_v14 }
 0x2e3   : > { %4080 = vmatpush3.bf16.msra.mxu1 %v4396_v33  ;;  %4081 = vmatprep.mubr.msk.bf16.mxu1 %vm4484_vm1, %v4483_v22 }
 0x2e4   : > { %4136 = vmatmul.mubr.msk.bf16.vlgmr.msra.gmra.mrb[116].mxu0 %vm3018_vm4, %v3015_v44  ;;  %4091 = vmatprep.subr.bf16.mxu1 %v4483_v22 }
 0x2e5   : > { %4171 = vmatprep.mubr.msk.bf16.mxu0 %vm4484_vm1, %v4483_v22  ;;  %4156 = vmatpush3.bf16.msra.mxu0 %v4407_v21 }
 0x2e6   : > { %4157 = vmatprep.subr.bf16.mxu0 %v4483_v22 }
 0x2e9   : > { %4158 = vmatpush3.bf16.msra.mxu0 %v4408_v39 }
 0x2ea   : > { %4082 = vmatmul.mubr.msk.bf16.vlgmr.msra.gmra.mrb[96].mxu1 %vm2173_vm2, %v2559_v53  ;;  %4159 = vmatprep.subr.bf16.mxu0 %v4483_v22 }
 0x2eb   : > { %4092 = vmatpush3.bf16.msra.mxu1 %v4397_v35  ;;  %4093 = vmatprep.mubr.msk.bf16.mxu1 %vm4484_vm1, %v4483_v22 }
 0x2ec   : > { %4103 = vmatprep.subr.bf16.mxu1 %v4483_v22 }
 0x2ed   : > { %4160 = vmatpush3.bf16.msra.mxu0 %v4409_v40 }
 0x2ee   : > { %4161 = vmatprep.subr.bf16.mxu0 %v4483_v22 }
 0x2f1   : > { %4162 = vmatpush3.bf16.msra.mxu0 %v4410_v46 }
 0x2f2   : > { %4094 = vmatmul.mubr.msk.bf16.vlgmr.msra.gmra.mrb[100].mxu1 %vm2173_vm2, %v2658_v32  ;;  %4163 = vmatprep.subr.bf16.mxu0 %v4483_v22  ;;  %v3017_v32 = vld [vmem:[%s5400_s9] sm:$0x1] }
 0x2f3   : > { %4104 = vmatpush3.bf16.msra.mxu1 %v4398_v48  ;;  %4105 = vmatprep.mubr.msk.bf16.mxu1 %vm4484_vm1, %v4483_v22 }
 0x2f4   : > { %4115 = vmatprep.subr.bf16.mxu1 %v4483_v22 }
 0x2f5   : > { %4164 = vmatpush3.bf16.msra.mxu0 %v4411_v54 }
 0x2f6   : > { %4165 = vmatprep.subr.bf16.mxu0 %v4483_v22 }
 0x2f9   : > { %4166 = vmatpush3.bf16.msra.mxu0 %v4412_v56 }
 0x2fa   : > { %4106 = vmatmul.mubr.msk.bf16.vlgmr.msra.gmra.mrb[104].mxu1 %vm2173_vm2, %v2758_v51  ;;  %4167 = vmatprep.subr.bf16.mxu0 %v4483_v22 }
 0x2fb   : > { %4116 = vmatpush3.bf16.msra.mxu1 %v4399_v55  ;;  %4117 = vmatprep.mubr.msk.bf16.mxu1 %vm4484_vm1, %v4483_v22 }
 0x2fc   : > { %4127 = vmatprep.subr.bf16.mxu1 %v4483_v22 }
 0x302   : > { %4118 = vmatmul.mubr.msk.bf16.vlgmr.msra.gmra.mrb[108].mxu1 %vm2173_vm2, %v2858_v34 }
 0x303   : > { %4128 = vmatpush3.bf16.msra.mxu1 %v4400_v49  ;;  %4129 = vmatprep.mubr.msk.bf16.mxu1 %vm4484_vm1, %v4483_v22 }
 0x304   : > { %4139 = vmatprep.subr.bf16.mxu1 %v4483_v22 }
 0x30a   : > { %4130 = vmatmul.mubr.msk.bf16.vlgmr.msra.gmra.mrb[112].mxu1 %vm2173_vm2, %v2958_v58 }
 0x30b   : > { %4151 = vmatprep.mubr.msk.bf16.mxu1 %vm4484_vm1, %v4483_v22  ;;  %4140 = vmatpush3.bf16.msra.mxu1 %v4401_v59 }
 0x30c   : > { %4141 = vmatprep.subr.bf16.mxu1 %v4483_v22 }
 0x30f   : > { %4142 = vmatpush3.bf16.msra.mxu1 %v4402_v0 }
 0x310   : > { %4143 = vmatprep.subr.bf16.mxu1 %v4483_v22 }
 0x313   : > { %4144 = vmatpush3.bf16.msra.mxu1 %v4403_v8 }
 0x314   : > { %4145 = vmatprep.subr.bf16.mxu1 %v4483_v22 }
 0x317   : > { %4146 = vmatpush3.bf16.msra.mxu1 %v4404_v10 }
 0x318   : > { %4147 = vmatprep.subr.bf16.mxu1 %v4483_v22 }
 0x31b   : > { %4148 = vmatpush3.bf16.msra.mxu1 %v4405_v36 }
 0x31c   : > { %4149 = vmatprep.subr.bf16.mxu1 %v4483_v22 }
 0x31f   : > { %4150 = vmatpush3.bf16.msra.mxu1 %v4406_v38 }
 0x320   : > { %4175 = vmatprep.subr.bf16.mxu1 %v4483_v22 }
 0x38d   : > { %v2211_v20 = vpop.f32.mrb[72].mxu1 }
 0x38e   : > { %v4041_v2 = vpop.f32.mrb[73].mxu1 }
 0x38f   : > { %v2214_v25 = vpop.f32.mrb[74].mxu1  ;;  %v2547_v5 = vpop.f32.mrb[96].mxu0 }
 0x390   : > { %v4042_v52 = vpop.f32.mrb[75].mxu1  ;;  %v4077_v3 = vpop.f32.mrb[97].mxu0 }
 0x391   : > { %v2550_v47 = vpop.f32.mrb[98].mxu0 }
 0x392   : > { %v4078_v60 = vpop.f32.mrb[99].mxu0 }
 0x395   : > { %v2267_v57 = vpop.f32.mrb[76].mxu1 }
 0x396   : > { %v4047_v42 = vpop.f32.mrb[77].mxu1 }
 0x397   : > { %v2270_v11 = vpop.f32.mrb[78].mxu1  ;;  %v2651_v12 = vpop.f32.mrb[100].mxu0 }
 0x398   : > { %v2652_v28 = vadd.f32 %v2651_v12, %v2211_v20  ;;  %v4048_v63 = vpop.f32.mrb[79].mxu1  ;;  %v4089_v24 = vpop.f32.mrb[101].mxu0 }
 0x399   : > { %v2654_v1 = vpop.f32.mrb[102].mxu0 }
 0x39a   : > { %v4090_v61 = vpop.f32.mrb[103].mxu0 }
 0x39d   : > { %v2323_v13 = vpop.f32.mrb[80].mxu1 }
 0x39e   : > { %v4053_v16 = vpop.f32.mrb[81].mxu1 }
 0x39f   : > { %v2326_v27 = vpop.f32.mrb[82].mxu1  ;;  %v2752_v17 = vpop.f32.mrb[104].mxu0 }
 0x3a0   : > { %v2753_v23 = vadd.f32 %v2752_v17, %v2323_v13  ;;  %v4054_v37 = vpop.f32.mrb[83].mxu1  ;;  %v4101_v29 = vpop.f32.mrb[105].mxu0 }
 0x3a1   : > { %v2755_v31 = vpop.f32.mrb[106].mxu0 }
 0x3a2   : > { %v4102_v50 = vpop.f32.mrb[107].mxu0 }
 0x3a3   : > { %v4414_v50 = vld [vmem:[%s5404_s13 + $0x38] sm:$0xff]  }
 0x3a5   : > { %v2379_v43 = vpop.f32.mrb[84].mxu1 }
 0x3a6   : > { %v4059_v19 = vpop.f32.mrb[85].mxu1 }
 0x3a7   : > { %v2382_v6 = vpop.f32.mrb[86].mxu1  ;;  %v2852_v7 = vpop.f32.mrb[108].mxu0  ;;  %v4416_v19 = vld [vmem:[%s5406_s15 + $0x8] sm:$0xff]  }
 0x3a8   : > { %v4060_v26 = vpop.f32.mrb[87].mxu1  ;;  %v4113_v30 = vpop.f32.mrb[109].mxu0 }
 0x3a9   : > { %v2855_v45 = vpop.f32.mrb[110].mxu0 }
 0x3aa   : > { %v4114_v41 = vpop.f32.mrb[111].mxu0 }
 0x3ad   : > { %v2435_v15 = vpop.f32.mrb[88].mxu1 }
 0x3ae   : > { %v2853_v18 = vadd.f32 %v2852_v7, %v2435_v15  ;;  %v4065_v4 = vpop.f32.mrb[89].mxu1  ;;  %v3161_v7 = vld [vmem:[%s5403_s12] sm:$0x1] }
 0x3af   : > { %v2438_v9 = vpop.f32.mrb[90].mxu1  ;;  %v2952_v62 = vpop.f32.mrb[112].mxu0 }
 0x3b0   : > { %v2953_v33 = vadd.f32 %v2952_v62, %v2547_v5  ;;  %v4066_v14 = vpop.f32.mrb[91].mxu1  ;;  %v4125_v44 = vpop.f32.mrb[113].mxu0  ;;  %v4417_v9 = vld [vmem:[%s5406_s15 + $0x10] sm:$0xff]   ;;  %v4418_v62 = vld [vmem:[%s5406_s15 + $0x18] sm:$0xff]  }
 0x3b1   : > { %v2955_v35 = vpop.f32.mrb[114].mxu0 }
 0x3b2   : > { %v4126_v53 = vpop.f32.mrb[115].mxu0 }
 0x3b5   : > { %v2491_v48 = vpop.f32.mrb[92].mxu1 }
 0x3b6   : > { %v4071_v55 = vpop.f32.mrb[93].mxu1 }
 0x3b7   : > { %v2494_v51 = vpop.f32.mrb[94].mxu1  ;;  %v3060_v49 = vpop.f32.mrb[116].mxu0 }
 0x3b8   : > { %v3061_v34 = vadd.f32 %v3060_v49, %v3017_v32  ;;  %v4072_v58 = vpop.f32.mrb[95].mxu1  ;;  %v4137_v59 = vpop.f32.mrb[117].mxu0 }
 0x3b9   : > { %v3063_v0 = vpop.f32.mrb[118].mxu0 }
 0x3ba   : > { %v3066_v8 = vmax.f32 %v3061_v34, 0.0  ;;  %v4138_v10 = vpop.f32.mrb[119].mxu0 }
 0x3bc   : > { %v3067_v36 = vpack.c.bf16 %v3066_v8, %v3066_v8 }
 0x3bd   : > { %v2603_v38 = vpop.f32.mrb[96].mxu1 }
 0x3be   : > { %v4083_v21 = vpop.f32.mrb[97].mxu1  ;;  %4152 = vmatmul.mubr.msk.bf16.vlgmr.msra.gmra.mrb[116].mxu1 %vm3116_vm5, %v3067_v36 }
 0x3bf   : > { %v2606_v39 = vpop.f32.mrb[98].mxu1  ;;  %4183 = vmatprep.mubr.msk.bf16.mxu1 %vm4484_vm1, %v4483_v22 }
 0x3c0   : > { %v4084_v40 = vpop.f32.mrb[99].mxu1 }
 0x3c5   : > { %v2702_v46 = vpop.f32.mrb[100].mxu1 }
 0x3c6   : > { %v2703_v54 = vadd.f32 %v2702_v46, %v2267_v57  ;;  %v4095_v56 = vpop.f32.mrb[101].mxu1 }
 0x3c7   : > { %v2705_v20 = vpop.f32.mrb[102].mxu1 }
 0x3c8   : > { %v3008_v2 = vadd.f32 %v2703_v54, %v2652_v28  ;;  %v4096_v25 = vpop.f32.mrb[103].mxu1 }
 0x3cd   : > { %v2802_v5 = vpop.f32.mrb[104].mxu1 }
 0x3ce   : > { %v2803_v52 = vadd.f32 %v2802_v5, %v2379_v43  ;;  %v4107_v3 = vpop.f32.mrb[105].mxu1  ;;  %v4415_v43 = vld [vmem:[%s5406_s15] sm:$0xff]  }
 0x3cf   : > { %v2805_v47 = vpop.f32.mrb[106].mxu1  ;;  %4176 = vmatpush3.bf16.msra.mxu1 %v4415_v43 }
 0x3d0   : > { %v3009_v60 = vadd.f32 %v2803_v52, %v2753_v23  ;;  %v4108_v42 = vpop.f32.mrb[107].mxu1  ;;  %v4413_v23 = vld [vmem:[%s5404_s13 + $0x30] sm:$0xff]   ;;  %4177 = vmatprep.subr.bf16.mxu1 %v4483_v22 }
 0x3d1   : > { %4168 = vmatpush3.bf16.msra.mxu0 %v4413_v23 }
 0x3d2   : > { %v3012_v11 = vadd.f32 %v3009_v60, %v3008_v2  ;;  %4169 = vmatprep.subr.bf16.mxu0 %v4483_v22 }
 0x3d3   : > { %4178 = vmatpush3.bf16.msra.mxu1 %v4416_v19 }
 0x3d4   : > { %4179 = vmatprep.subr.bf16.mxu1 %v4483_v22 }
 0x3d5   : > { %v2902_v12 = vpop.f32.mrb[108].mxu1  ;;  %4170 = vmatpush3.bf16.msra.mxu0 %v4414_v50 }
 0x3d6   : > { %v2903_v63 = vadd.f32 %v2902_v12, %v2491_v48  ;;  %v4119_v24 = vpop.f32.mrb[109].mxu1 }
 0x3d7   : > { %v2905_v1 = vpop.f32.mrb[110].mxu1  ;;  %4180 = vmatpush3.bf16.msra.mxu1 %v4417_v9 }
 0x3d8   : > { %v3010_v61 = vadd.f32 %v2903_v63, %v2853_v18  ;;  %v4120_v13 = vpop.f32.mrb[111].mxu1  ;;  %4181 = vmatprep.subr.bf16.mxu1 %v4483_v22  ;;  %v3280_v22 = vld [vmem:[%s5407_s16] sm:$0x1] }
 0x3db   : > { %4182 = vmatpush3.bf16.msra.mxu1 %v4418_v62 }
 0x3dd   : > { %v3002_v16 = vpop.f32.mrb[112].mxu1 }
 0x3de   : > { %v3003_v27 = vadd.f32 %v3002_v16, %v2603_v38  ;;  %v4131_v57 = vpop.f32.mrb[113].mxu1 }
 0x3df   : > { %v3005_v17 = vpop.f32.mrb[114].mxu1 }
 0x3e0   : > { %v3011_v37 = vadd.f32 %v3003_v27, %v2953_v33  ;;  %v4132_v28 = vpop.f32.mrb[115].mxu1  ;;  %v3181_v33 = vld [vmem:[%s5405_s14] sm:$0x1] }
 0x3e2   : > { %v3013_v29 = vadd.f32 %v3011_v37, %v3010_v61 }
 0x3e4   : > { %v3014_v31 = vadd.f32 %v3013_v29, %v3012_v11 }
 0x491   : > { %v3154_v6 = vpop.f32.mrb[116].mxu1 }
 0x492   : > { %v3160_v26 = vadd.f32 %v3154_v6, %v3014_v31  ;;  %v4153_v30 = vpop.f32.mrb[117].mxu1 }
 0x493   : > { %v3157_v45 = vpop.f32.mrb[118].mxu1 }
 0x494   : > { %v3162_v41 = vadd.f32 %v3161_v7, %v3160_v26  ;;  %v4154_v15 = vpop.f32.mrb[119].mxu1 }
 0x496   : > { %v3163_v18 = vmax.f32 %v3162_v41, 0.0 }
 0x498   : > { %v3164_v4 = vpack.c.bf16 %v3163_v18, %v3163_v18 }
 0x49a   : > { %4172 = vmatmul.mubr.bf16.vlgmr.msra.gmra.mrb[120].mxu0 %v3164_v4 }
 0x56d   : > { %v3264_v14 = vpop.f32.mrb[120].mxu0 }
 0x56e   : > { %v3265_v44 = vadd.f32 %v3264_v14, %v3181_v33  ;;  %v4173_v35 = vpop.f32.mrb[121].mxu0 }
 0x56f   : > { %v3267_v53 = vpop.f32.mrb[122].mxu0 }
 0x570   : > { %v3270_v48 = vmax.f32 %v3265_v44, 0.0  ;;  %v4174_v32 = vpop.f32.mrb[123].mxu0 }
 0x572   : > { %v3271_v55 = vpack.c.bf16 %v3270_v48, %v3270_v48 }
 0x574   : > { %4184 = vmatmul.mubr.msk.bf16.vlgmr.msra.gmra.mrb[120].mxu1 %vm1345_vm0, %v3271_v55 }
 0x647   : > { %v3342_v51 = vpop.f32.mrb[120].mxu1 }
 0x648   : > { %v3343_v49 = vadd.f32 %v3342_v51, %v3280_v22  ;;  %v4185_v34 = vpop.f32.mrb[121].mxu1 }
 0x649   : > { %v3345_v58 = vpop.f32.mrb[122].mxu1 }
 0x64a   : > { %v4186_v59 = vpop.f32.mrb[123].mxu1  ;;  %3349 = vst.msk [vmem:[%s551_s21] sm:$0x1] %vm3348_vm6, %v3343_v49 }
 0x64b   : > { %4432 = shalt.err (!%p4429_p3)
}
 0x64c   : > { %s4433_s27 = scalar_lea.hbm %s5349_s26, 16  ;;  %s4437_s21 = scalar_lea.hbm %s5429_s18, 32 }
 0x64d   : > { %p4434_p4 = scmp.ne.s32.totalorder %s5349_s26, %s4433_s27  ;;  %p4438_p9 = scmp.lt.u32.totalorder %s5349_s26, %s5429_s18 }
 0x64e   : > { %p4439_p10 = scmp.lt.u32.totalorder %s4437_s21, %s4433_s27  ;;  %p4441_p12 = scmp.lt.u32.totalorder %s4433_s27, %s5349_s26 }
 0x64f   : > { %p4435_p7 = pnand %p4434_p4, %p4614_p5 }
 0x650   : > { %p4440_p11 = por %p4439_p10, %p4438_p9 }
 0x651   : > { %p4436_p8 = pneg %p4435_p7 }
 0x652   : > { %p4442_p13 = por %p4441_p12, %p4440_p11 }
 0x654   : > { %p4443_p0 = pnand %p4442_p13, %p4436_p8 }
 0x656   : > { %4446 = shalt.err (!%p4443_p0)
}
 0x657   : > { %4188 = dma.vmem_to_hbm [thread:$0]  (%p4614_p5), %s5351_s24, 16, %s5349_s26, %s3351_s28  }
 0x658 PF: > { %s5430_s19 = sld [smem:[#allocation7_spill]]  ;;  %s5431_s0 = sld [smem:[#allocation5_spill]] }
 0x65e   : > { %p4194_p1 = scmp.ge.s32.totalorder %s5430_s19, 2  ;;  %s3375_s29 = sand.u32 1, %s5431_s0  }
 0x65f   : > { %s3376_s30 = scalar_lea.sflag [#allocation3], %s3375_s29 }
 0x660   : > { %p4191_p2 = pnand %p4194_p1, %p4618_p6 }
 0x662   : > { %4464 = dma.done.wait (!%p4191_p2), %s3376_s30, 16  }
 0x663   : > { %4466 = vsyncadd (!%p4191_p2), %s3376_s30, 4294967280  ;;  %s5433_s27 = sld [smem:[#allocation8_spill]]  ;;  %s5434_s20 = sld [smem:[#allocation6_spill]] }
 0x664   : > { %s5435_s26 = sld [smem:[#allocation9_spill]]  ;;  %s5436_s24 = smov %s4473_s25 }
 0x669   : > { %p27_p3 = scmp.ge.s32.totalorder %s5433_s27, 4   ;;  %s5437_s25 = smov %s5434_s20 }
 0x66b   :  { %29 = sbr.rel (!%p27_p3) target bundleno = 7 (0x7), region = 141 }
 0x672   :  { %3380 = vsyncpa [#allocation3], 1 }
 0x673   :  { %3382 = vsyncpa [#allocation3 + $0x1], 1 }

</bundles_post_ra>
